<compile_context>
chip_gen: v7x
topology: tpu7x:2x2x1
jax: 0.10.0
libtpu: 0.0.40
codegen_flags: <defaults>
</compile_context>

<pallas_src>
import functools

import numpy as np
import jax
import jax.numpy as jnp
from jax.experimental import pallas as pl
from jax.experimental.pallas import tpu as pltpu

D_FF = 2048                       # nn.TransformerEncoderLayer default dim_feedforward
_VMEM_LIMIT = 48 * 1024 * 1024    # headroom inside v7x's 64 MiB physical VMEM


def _round_up(x, m):
    return ((x + m - 1) // m) * m


def _pick_tile(n, cap, step):
    """Largest multiple of `step` that divides n and is <= cap (requires n % step == 0)."""
    t = min(cap, n)
    t -= t % step
    while n % t:
        t -= step
    return t


# ---------------------------------------------------------------------------
# Tiled matmul: out = act(a @ b + bias); bf16 MXU operands, f32 accumulation,
# bf16 (or f32) output cast in the finalize epilogue.
# ---------------------------------------------------------------------------
def _matmul_kernel(a_ref, b_ref, bias_ref, o_ref, acc_ref, *, activation):
    @pl.when(pl.program_id(2) == 0)
    def _init():
        acc_ref[...] = jnp.zeros_like(acc_ref)

    acc_ref[...] += jnp.dot(a_ref[...], b_ref[...],
                            preferred_element_type=jnp.float32)

    @pl.when(pl.program_id(2) == pl.num_programs(2) - 1)
    def _finalize():
        out = acc_ref[...] + bias_ref[...]
        if activation == "relu":
            out = jnp.maximum(out, 0.0)
        o_ref[...] = out.astype(o_ref.dtype)


def matmul(a, b, bias, *, activation="none", out_dtype=jnp.bfloat16,
           tm=512, tn=512, tk=512):
    M, K = a.shape
    K2, N = b.shape
    assert K == K2 and M % 16 == 0 and K % 128 == 0 and N % 128 == 0
    tm = _pick_tile(M, tm, 16)        # 16: bf16 sublane packing
    tn = _pick_tile(N, tn, 128)
    tk = _pick_tile(K, tk, 128)
    return pl.pallas_call(
        functools.partial(_matmul_kernel, activation=activation),
        out_shape=jax.ShapeDtypeStruct((M, N), out_dtype),
        grid=(M // tm, N // tn, K // tk),
        in_specs=[
            pl.BlockSpec((tm, tk), lambda i, j, k: (i, k)),
            pl.BlockSpec((tk, tn), lambda i, j, k: (k, j)),
            pl.BlockSpec((1, tn), lambda i, j, k: (0, j)),
        ],
        out_specs=pl.BlockSpec((tm, tn), lambda i, j, k: (i, j)),
        scratch_shapes=[pltpu.VMEM((tm, tn), jnp.float32)],
        compiler_params=pltpu.CompilerParams(
            dimension_semantics=("parallel", "parallel", "arbitrary"),
            vmem_limit_bytes=_VMEM_LIMIT),
    )(a, b, bias)


# ---------------------------------------------------------------------------
# Fused attention sub-layer: NB sequences per grid step.
# scores -> masked softmax -> P@V -> out_proj -> residual -> LayerNorm1.
# ---------------------------------------------------------------------------
def _attn_ln_kernel(x_ref, q_ref, k_ref, v_ref, wo_ref, bo_ref, g_ref, be_ref,
                    o_ref, *, L, U, scale, eps):
    q = q_ref[...]                          # (NB, Lp, Up) bf16
    k = k_ref[...]
    v = v_ref[...]
    # scores[b, i, j] = q_bi . k_bj / sqrt(U)   (batched over NB sequences)
    s = jnp.einsum("bqd,bkd->bqk", q, k,
                   preferred_element_type=jnp.float32) * scale
    if s.shape[-1] != L:                    # hide sublane-padded keys only
        col = jax.lax.broadcasted_iota(jnp.int32, s.shape, 2)
        s = jnp.where(col < L, s, -1e30)
    mx = jnp.max(s, axis=-1, keepdims=True)
    e = jnp.exp(s - mx)                     # masked cols underflow to exactly 0
    denom = jnp.sum(e, axis=-1, keepdims=True)
    p = (e * pl.reciprocal(denom, approx=True)).astype(jnp.bfloat16)  # EUP divide
    ctx = jnp.einsum("bqk,bkd->bqd", p, v, preferred_element_type=jnp.float32)
    wo_b = jnp.broadcast_to(wo_ref[...], (ctx.shape[0],) + wo_ref.shape)
    proj = jnp.einsum("bqd,bde->bqe", ctx.astype(jnp.bfloat16), wo_b,
                      preferred_element_type=jnp.float32)
    h = x_ref[...] + proj + bo_ref[...]     # residual add (f32)
    # Stable two-pass LayerNorm over the real U features (padded lanes of h are 0).
    inv = 1.0 / U
    mean = jnp.sum(h, axis=-1, keepdims=True) * inv
    d = h - mean
    if U != h.shape[-1]:
        lane = jax.lax.broadcasted_iota(jnp.int32, h.shape, 2)
        d = jnp.where(lane < U, d, 0.0)
    var = jnp.sum(d * d, axis=-1, keepdims=True) * inv
    o_ref[...] = (d * jax.lax.rsqrt(var + eps) * g_ref[...]
                  + be_ref[...]).astype(o_ref.dtype)


def attention_block(x3, qkv3, wo, bo, gamma, beta, *, L, U, nb):
    Bp, Lp, Up3 = qkv3.shape
    Up = Up3 // 3

    def qkv_spec(blk):
        return pl.BlockSpec((nb, Lp, Up), lambda i, b=blk: (i, 0, b))

    seq_f32 = pl.BlockSpec((nb, Lp, Up), lambda i: (i, 0, 0))
    vec = pl.BlockSpec((1, Up), lambda i: (0, 0))
    return pl.pallas_call(
        functools.partial(_attn_ln_kernel, L=L, U=U,
                          scale=1.0 / float(np.sqrt(U)), eps=1e-5),
        out_shape=jax.ShapeDtypeStruct((Bp, Lp, Up), jnp.bfloat16),
        grid=(Bp // nb,),
        in_specs=[seq_f32,                       # x (residual, f32)
                  qkv_spec(0), qkv_spec(1), qkv_spec(2),   # Q / K / V lane-blocks
                  pl.BlockSpec((Up, Up), lambda i: (0, 0)),
                  vec, vec, vec],
        out_specs=pl.BlockSpec((nb, Lp, Up), lambda i: (i, 0, 0)),
        compiler_params=pltpu.CompilerParams(
            dimension_semantics=("parallel",),
            vmem_limit_bytes=_VMEM_LIMIT),
    )(x3, qkv3, qkv3, qkv3, wo, bo, gamma, beta)


# ---------------------------------------------------------------------------
# FFN2 matmul with residual-add + LayerNorm2 fused into the finalize epilogue
# (the full lane-dense (tm, Up) output row tile is resident at finalize).
# ---------------------------------------------------------------------------
def _ffn2_resln_kernel(a_ref, b_ref, bias_ref, res_ref, g_ref, be_ref,
                       o_ref, acc_ref, *, U, eps):
    @pl.when(pl.program_id(1) == 0)
    def _init():
        acc_ref[...] = jnp.zeros_like(acc_ref)

    acc_ref[...] += jnp.dot(a_ref[...], b_ref[...],
                            preferred_element_type=jnp.float32)

    @pl.when(pl.program_id(1) == pl.num_programs(1) - 1)
    def _finalize():
        h = acc_ref[...] + bias_ref[...] + res_ref[...].astype(jnp.float32)
        inv = 1.0 / U
        mean = jnp.sum(h, axis=-1, keepdims=True) * inv   # padded lanes of h are 0
        d = h - mean
        if U != h.shape[-1]:
            lane = jax.lax.broadcasted_iota(jnp.int32, h.shape, 1)
            d = jnp.where(lane < U, d, 0.0)
        var = jnp.sum(d * d, axis=-1, keepdims=True) * inv
        o_ref[...] = (d * jax.lax.rsqrt(var + eps) * g_ref[...]
                      + be_ref[...]).astype(o_ref.dtype)


def ffn2_add_layernorm(ff, w2, b2, res, gamma, beta, *, U,
                       out_dtype=jnp.bfloat16, tm=512, tk=512, eps=1e-5):
    M, K = ff.shape
    _, N = w2.shape                     # N == Up: single lane block covers the row
    tm = _pick_tile(M, tm, 16)
    tk = _pick_tile(K, tk, 128)
    return pl.pallas_call(
        functools.partial(_ffn2_resln_kernel, U=U, eps=eps),
        out_shape=jax.ShapeDtypeStruct((M, N), out_dtype),
        grid=(M // tm, K // tk),
        in_specs=[pl.BlockSpec((tm, tk), lambda i, k: (i, k)),
                  pl.BlockSpec((tk, N), lambda i, k: (k, 0)),
                  pl.BlockSpec((1, N), lambda i, k: (0, 0)),
                  pl.BlockSpec((tm, N), lambda i, k: (i, 0)),
                  pl.BlockSpec((1, N), lambda i, k: (0, 0)),
                  pl.BlockSpec((1, N), lambda i, k: (0, 0))],
        out_specs=pl.BlockSpec((tm, N), lambda i, k: (i, 0)),
        scratch_shapes=[pltpu.VMEM((tm, N), jnp.float32)],
        compiler_params=pltpu.CompilerParams(
            dimension_semantics=("parallel", "arbitrary"),
            vmem_limit_bytes=_VMEM_LIMIT),
    )(ff, w2, b2, res, gamma, beta)


# ---------------------------------------------------------------------------
# Parameters: PyTorch-layout init, then a ONE-TIME pad/transpose/cast to the
# padded bf16 layouts the kernels consume (hoisted out of the forward).
# ---------------------------------------------------------------------------
def init_params(key, u_dim, g_dim):
    ks = jax.random.split(key, 10)

    def nrm(k, shape, scale=0.1):
        return jax.random.normal(k, shape, jnp.float32) * scale

    return {
        "in_proj_w": nrm(ks[0], (3 * u_dim, u_dim)),
        "in_proj_b": nrm(ks[1], (3 * u_dim,)),
        "out_proj_w": nrm(ks[2], (u_dim, u_dim)),
        "out_proj_b": nrm(ks[3], (u_dim,)),
        "ffn1_w": nrm(ks[4], (D_FF, u_dim)),
        "ffn1_b": nrm(ks[5], (D_FF,)),
        "ffn2_w": nrm(ks[6], (u_dim, D_FF)),
        "ffn2_b": nrm(ks[7], (u_dim,)),
        "ln1_g": jnp.ones((u_dim,), jnp.float32),
        "ln1_b": jnp.zeros((u_dim,), jnp.float32),
        "ln2_g": jnp.ones((u_dim,), jnp.float32),
        "ln2_b": jnp.zeros((u_dim,), jnp.float32),
        "tout_w": nrm(ks[8], (g_dim, u_dim)),
        "tout_b": nrm(ks[9], (g_dim,)),
    }


def _embed(w, rows, cols, dtype):
    """Zero-pad w (top-left aligned) into a (rows, cols) array of dtype."""
    out = jnp.zeros((rows, cols), dtype)
    return out.at[:w.shape[0], :w.shape[1]].set(w.astype(dtype))


def prepare_params(p, u_dim, g_dim):
    U, G = u_dim, g_dim
    Up, Gp = _round_up(U, 128), _round_up(G, 128)
    bf = jnp.bfloat16
    wq, wk, wv = (p["in_proj_w"][i * U:(i + 1) * U].T for i in range(3))
    bq, bk, bv = (p["in_proj_b"][i * U:(i + 1) * U].reshape(1, U) for i in range(3))
    return {
        # Q/K/V each land on a 128-lane-aligned Up segment of the fused weight.
        "w_qkv": jnp.concatenate([_embed(w, Up, Up, bf) for w in (wq, wk, wv)], axis=1),
        "b_qkv": jnp.concatenate([_embed(b, 1, Up, jnp.float32) for b in (bq, bk, bv)], axis=1),
        "w_o": _embed(p["out_proj_w"].T, Up, Up, bf),
        "b_o": _embed(p["out_proj_b"].reshape(1, U), 1, Up, jnp.float32),
        "ln1_g": _embed(p["ln1_g"].reshape(1, U), 1, Up, jnp.float32),
        "ln1_b": _embed(p["ln1_b"].reshape(1, U), 1, Up, jnp.float32),
        "w_ff1": _embed(p["ffn1_w"].T, Up, D_FF, bf),
        "b_ff1": p["ffn1_b"].reshape(1, D_FF).astype(jnp.float32),
        "w_ff2": _embed(p["ffn2_w"].T, D_FF, Up, bf),
        "b_ff2": _embed(p["ffn2_b"].reshape(1, U), 1, Up, jnp.float32),
        "ln2_g": _embed(p["ln2_g"].reshape(1, U), 1, Up, jnp.float32),
        "ln2_b": _embed(p["ln2_b"].reshape(1, U), 1, Up, jnp.float32),
        "w_out": _embed(p["tout_w"].T, Up, Gp, bf),
        "b_out": _embed(p["tout_b"].reshape(1, G), 1, Gp, jnp.float32),
    }


# ---------------------------------------------------------------------------
# SeqContext forward: post-norm TransformerEncoderLayer (nhead=1) + Linear.
# Pad once at the top, slice once at the bottom; padded bf16 slabs in between.
# ---------------------------------------------------------------------------
def seq_context(pp, x, *, u_dim, g_dim):
    B, L, U = x.shape
    assert U == u_dim
    Up = pp["w_o"].shape[0]
    Gp = pp["w_out"].shape[1]
    Lp = _round_up(L, 16)                       # bf16 sublane packing
    nb = B if B < 8 else 8                      # sequences per attention grid step
    Bp = _round_up(B, nb)

    x3 = jnp.pad(x.astype(jnp.float32),
                 ((0, Bp - B), (0, Lp - L), (0, Up - U)))       # (Bp, Lp, Up) f32
    x_bf = x3.astype(jnp.bfloat16).reshape(Bp * Lp, Up)

    # Fused Q/K/V projection -> (Bp*Lp, 3*Up) bf16, segments lane-aligned.
    qkv = matmul(x_bf, pp["w_qkv"], pp["b_qkv"])
    qkv3 = qkv.reshape(Bp, Lp, 3 * Up)

    # Fused scores + softmax + P@V + out_proj + residual + LN1.
    h1 = attention_block(x3, qkv3, pp["w_o"], pp["b_o"],
                         pp["ln1_g"], pp["ln1_b"], L=L, U=U, nb=nb)
    h1f = h1.reshape(Bp * Lp, Up)               # bf16

    # Feed-forward: relu fused into FFN1 epilogue; residual+LN2 fused into FFN2.
    ff = matmul(h1f, pp["w_ff1"], pp["b_ff1"], activation="relu")
    h2 = ffn2_add_layernorm(ff, pp["w_ff2"], pp["b_ff2"], h1f,
                            pp["ln2_g"], pp["ln2_b"], U=U)

    # transformer_out Linear(u_dim, g_dim); the one and only output slice.
    out = matmul(h2, pp["w_out"], pp["b_out"], out_dtype=jnp.float32)
    return out.reshape(Bp, Lp, Gp)[:B, :L, :g_dim]


# ---------------------------------------------------------------------------
# Pure-JAX f32 reference (PyTorch semantics) for a loose tolerance check.
# ---------------------------------------------------------------------------
def _ln_ref(h, g, b, eps=1e-5):
    mean = jnp.mean(h, axis=-1, keepdims=True)
    var = jnp.mean((h - mean) ** 2, axis=-1, keepdims=True)
    return (h - mean) * jax.lax.rsqrt(var + eps) * g + b


def reference(p, x):
    B, L, U = x.shape
    xf = x.reshape(B * L, U)
    qkv = xf @ p["in_proj_w"].T + p["in_proj_b"]
    q = qkv[:, :U].reshape(B, L, U)
    k = qkv[:, U:2 * U].reshape(B, L, U)
    v = qkv[:, 2 * U:].reshape(B, L, U)
    s = jnp.einsum("bqd,bkd->bqk", q, k) / jnp.sqrt(jnp.float32(U))
    a = jax.nn.softmax(s, axis=-1)
    ctx = jnp.einsum("bqk,bkd->bqd", a, v).reshape(B * L, U)
    proj = ctx @ p["out_proj_w"].T + p["out_proj_b"]
    h1 = _ln_ref(xf + proj, p["ln1_g"], p["ln1_b"])
    ff = jnp.maximum(h1 @ p["ffn1_w"].T + p["ffn1_b"], 0.0)
    ff = ff @ p["ffn2_w"].T + p["ffn2_b"]
    h2 = _ln_ref(h1 + ff, p["ln2_g"], p["ln2_b"])
    out = h2 @ p["tout_w"].T + p["tout_b"]
    return out.reshape(B, L, -1)


# ---------------------------------------------------------------------------
if __name__ == "__main__":
    u_dim, g_dim = 32, 32
    B, L = 2, 8

    key = jax.random.PRNGKey(0)
    k_par, k_x = jax.random.split(key)
    params = init_params(k_par, u_dim, g_dim)
    x = jax.random.normal(k_x, (B, L, u_dim), jnp.float32)

    pp = prepare_params(params, u_dim, g_dim)    # one-time weight pad/cast/transpose
    fwd = jax.jit(functools.partial(seq_context, u_dim=u_dim, g_dim=g_dim))
    out = jax.block_until_ready(fwd(pp, x))

    ref = reference(params, x)
    assert out.shape == (B, L, g_dim)
    assert bool(jnp.all(jnp.isfinite(out)))
    # bf16 MXU operands + approx reciprocal: loose tolerance vs the f32 reference.
    assert float(jnp.max(jnp.abs(out - ref))) < 0.2
    print("KERNEL_OK")
</pallas_src>

<mosaic_0001>
module attributes {stable_mosaic.version = 11 : i64} {
  func.func @_matmul_kernel(%arg0: i32, %arg1: i32, %arg2: i32, %arg3: memref<32x128xbf16, #tpu.memory_space<vmem>>, %arg4: memref<128x384xbf16, #tpu.memory_space<vmem>>, %arg5: memref<1x384xf32, #tpu.memory_space<vmem>>, %arg6: memref<32x384xbf16, #tpu.memory_space<vmem>>, %arg7: memref<32x384xf32, #tpu.memory_space<vmem>>) attributes {dimension_semantics = [#tpu.dimension_semantics<parallel>, #tpu.dimension_semantics<parallel>, #tpu.dimension_semantics<arbitrary>], iteration_bounds = array<i64: 1, 1, 1>, scalar_prefetch = 0 : i64, scratch_operands = 1 : i64, tpu.core_type = #tpu.core_type<tc>, window_params = [{transform_indices = @transform_0, window_bounds = array<i64: 32, 128>}, {transform_indices = @transform_1, window_bounds = array<i64: 128, 384>}, {transform_indices = @transform_2, window_bounds = array<i64: 1, 384>}, {transform_indices = @transform_3, window_bounds = array<i64: 32, 384>}]} {
    %c0_i32 = arith.constant 0 : i32
    %0 = arith.cmpi eq, %arg2, %c0_i32 : i32
    %1 = arith.extui %0 : i1 to i32
    %c0_i32_0 = arith.constant 0 : i32
    %2 = arith.cmpi ne, %1, %c0_i32_0 : i32
    scf.if %2 {
      %cst_10 = arith.constant 0.000000e+00 : f32
      %12 = vector.broadcast %cst_10 : f32 to vector<32x384xf32>
      %c0_11 = arith.constant 0 : index
      %c0_12 = arith.constant 0 : index
      %13 = vector.load %arg7[%c0_11, %c0_12] : memref<32x384xf32, #tpu.memory_space<vmem>>, vector<32x384xf32>
      tpu.vector_store %arg7[%c0_11, %c0_12], %12 {strides = array<i32>} : memref<32x384xf32, #tpu.memory_space<vmem>>, vector<32x384xf32>,
    } else {
    }
    %c0 = arith.constant 0 : index
    %c0_1 = arith.constant 0 : index
    %3 = vector.load %arg7[%c0, %c0_1] : memref<32x384xf32, #tpu.memory_space<vmem>>, vector<32x384xf32>
    %c0_2 = arith.constant 0 : index
    %c0_3 = arith.constant 0 : index
    %4 = vector.load %arg3[%c0_2, %c0_3] : memref<32x128xbf16, #tpu.memory_space<vmem>>, vector<32x128xbf16>
    %c0_4 = arith.constant 0 : index
    %c0_5 = arith.constant 0 : index
    %5 = vector.load %arg4[%c0_4, %c0_5] : memref<128x384xbf16, #tpu.memory_space<vmem>>, vector<128x384xbf16>
    %cst = arith.constant dense<0.000000e+00> : vector<32x384xf32>
    %6 = tpu.matmul %4, %5, %cst {dimension_numbers = #tpu.dot_dimension_numbers<[1], [0], [0], [1], [0, 0, 1, 1], [], []>} : vector<32x128xbf16>, vector<128x384xbf16>, vector<32x384xf32> -> vector<32x384xf32>
    %7 = arith.addf %3, %6 : vector<32x384xf32>
    %c0_6 = arith.constant 0 : index
    %c0_7 = arith.constant 0 : index
    %8 = vector.load %arg7[%c0_6, %c0_7] : memref<32x384xf32, #tpu.memory_space<vmem>>, vector<32x384xf32>
    tpu.vector_store %arg7[%c0_6, %c0_7], %7 {strides = array<i32>} : memref<32x384xf32, #tpu.memory_space<vmem>>, vector<32x384xf32>,
    %c0_i32_8 = arith.constant 0 : i32
    %9 = arith.cmpi eq, %arg2, %c0_i32_8 : i32
    %10 = arith.extui %9 : i1 to i32
    %c0_i32_9 = arith.constant 0 : i32
    %11 = arith.cmpi ne, %10, %c0_i32_9 : i32
    scf.if %11 {
      %c0_10 = arith.constant 0 : index
      %c0_11 = arith.constant 0 : index
      %12 = vector.load %arg7[%c0_10, %c0_11] : memref<32x384xf32, #tpu.memory_space<vmem>>, vector<32x384xf32>
      %c0_12 = arith.constant 0 : index
      %c0_13 = arith.constant 0 : index
      %13 = vector.load %arg5[%c0_12, %c0_13] : memref<1x384xf32, #tpu.memory_space<vmem>>, vector<1x384xf32>
      %14 = vector.broadcast %13 : vector<1x384xf32> to vector<32x384xf32>
      %15 = arith.addf %12, %14 : vector<32x384xf32>
      %16 = arith.truncf %15 : vector<32x384xf32> to vector<32x384xbf16>
      %c0_14 = arith.constant 0 : index
      %c0_15 = arith.constant 0 : index
      %17 = vector.load %arg6[%c0_14, %c0_15] : memref<32x384xbf16, #tpu.memory_space<vmem>>, vector<32x384xbf16>
      tpu.vector_store %arg6[%c0_14, %c0_15], %16 {strides = array<i32>} : memref<32x384xbf16, #tpu.memory_space<vmem>>, vector<32x384xbf16>,
    } else {
    }
    return
  }
  func.func @transform_0(%arg0: i32, %arg1: i32, %arg2: i32) -> (i32, i32) {
    %c0_i32 = arith.constant 0 : i32
    return %arg0, %arg2 : i32, i32
  }
  func.func @transform_1(%arg0: i32, %arg1: i32, %arg2: i32) -> (i32, i32) {
    %c0_i32 = arith.constant 0 : i32
    return %arg2, %arg1 : i32, i32
  }
  func.func @transform_2(%arg0: i32, %arg1: i32, %arg2: i32) -> (i32, i32) {
    %c0_i32 = arith.constant 0 : i32
    %c0_i32_0 = arith.constant 0 : i32
    return %c0_i32, %arg1 : i32, i32
  }
  func.func @transform_3(%arg0: i32, %arg1: i32, %arg2: i32) -> (i32, i32) {
    %c0_i32 = arith.constant 0 : i32
    return %arg0, %arg1 : i32, i32
  }
}

module attributes {stable_mosaic.version = 11 : i64} {
  func.func @_attn_ln_kernel(%arg0: i32, %arg1: memref<2x16x128xf32, #tpu.memory_space<vmem>>, %arg2: memref<2x16x128xbf16, #tpu.memory_space<vmem>>, %arg3: memref<2x16x128xbf16, #tpu.memory_space<vmem>>, %arg4: memref<2x16x128xbf16, #tpu.memory_space<vmem>>, %arg5: memref<128x128xbf16, #tpu.memory_space<vmem>>, %arg6: memref<1x128xf32, #tpu.memory_space<vmem>>, %arg7: memref<1x128xf32, #tpu.memory_space<vmem>>, %arg8: memref<1x128xf32, #tpu.memory_space<vmem>>, %arg9: memref<2x16x128xbf16, #tpu.memory_space<vmem>>) attributes {dimension_semantics = [#tpu.dimension_semantics<parallel>], iteration_bounds = array<i64: 1>, scalar_prefetch = 0 : i64, scratch_operands = 0 : i64, tpu.core_type = #tpu.core_type<tc>, window_params = [{transform_indices = @transform_0, window_bounds = array<i64: 2, 16, 128>}, {transform_indices = @transform_1, window_bounds = array<i64: 2, 16, 128>}, {transform_indices = @transform_2, window_bounds = array<i64: 2, 16, 128>}, {transform_indices = @transform_3, window_bounds = array<i64: 2, 16, 128>}, {pipeline_mode = #tpu.pipeline_mode<synchronous>, transform_indices = @transform_4, window_bounds = array<i64: 128, 128>}, {pipeline_mode = #tpu.pipeline_mode<synchronous>, transform_indices = @transform_5, window_bounds = array<i64: 1, 128>}, {pipeline_mode = #tpu.pipeline_mode<synchronous>, transform_indices = @transform_6, window_bounds = array<i64: 1, 128>}, {pipeline_mode = #tpu.pipeline_mode<synchronous>, transform_indices = @transform_7, window_bounds = array<i64: 1, 128>}, {transform_indices = @transform_8, window_bounds = array<i64: 2, 16, 128>}]} {
    %c0 = arith.constant 0 : index
    %c0_0 = arith.constant 0 : index
    %c0_1 = arith.constant 0 : index
    %0 = vector.load %arg2[%c0, %c0_0, %c0_1] : memref<2x16x128xbf16, #tpu.memory_space<vmem>>, vector<2x16x128xbf16>
    %c0_2 = arith.constant 0 : index
    %c0_3 = arith.constant 0 : index
    %c0_4 = arith.constant 0 : index
    %1 = vector.load %arg3[%c0_2, %c0_3, %c0_4] : memref<2x16x128xbf16, #tpu.memory_space<vmem>>, vector<2x16x128xbf16>
    %c0_5 = arith.constant 0 : index
    %c0_6 = arith.constant 0 : index
    %c0_7 = arith.constant 0 : index
    %2 = vector.load %arg4[%c0_5, %c0_6, %c0_7] : memref<2x16x128xbf16, #tpu.memory_space<vmem>>, vector<2x16x128xbf16>
    "tpu.trace_start"() <{level = 10 : i32, message = "bqd,bkd->bqk"}> : () -> ()
    %cst = arith.constant dense<0.000000e+00> : vector<2x16x16xf32>
    %3 = tpu.matmul %0, %1, %cst {dimension_numbers = #tpu.dot_dimension_numbers<[2], [2], [1], [1], [0, 0, 0, 1, 1, 1], [0], [0]>} : vector<2x16x128xbf16>, vector<2x16x128xbf16>, vector<2x16x16xf32> -> vector<2x16x16xf32>
    "tpu.trace_stop"() : () -> ()
    %cst_8 = arith.constant 0.176776692 : f32
    %4 = vector.broadcast %cst_8 : f32 to vector<2x16x16xf32>
    %5 = arith.mulf %3, %4 : vector<2x16x16xf32>
    %6 = tpu.iota {dimensions = array<i32: 2>} : vector<2x16x16xi32>
    %c8_i32 = arith.constant 8 : i32
    %7 = vector.broadcast %c8_i32 : i32 to vector<2x16x16xi32>
    %8 = arith.cmpi slt, %6, %7 : vector<2x16x16xi32>
    %cst_9 = arith.constant -1.000000e+30 : f32
    %9 = vector.broadcast %cst_9 : f32 to vector<2x16x16xf32>
    %10 = arith.select %8, %5, %9 : vector<2x16x16xi1>, vector<2x16x16xf32>
    %cst_10 = arith.constant dense<0xFF800000> : vector<2x16xf32>
    %11 = vector.multi_reduction <maximumf>, %10, %cst_10 [2] : vector<2x16x16xf32> to vector<2x16xf32>
    %12 = vector.shape_cast %11 : vector<2x16xf32> to vector<2x16x1xf32>
    %13 = vector.broadcast %12 : vector<2x16x1xf32> to vector<2x16x16xf32>
    %14 = arith.subf %10, %13 : vector<2x16x16xf32>
    %15 = math.exp %14 : vector<2x16x16xf32>
    %cst_11 = arith.constant dense<0.000000e+00> : vector<2x16xf32>
    %16 = vector.multi_reduction <add>, %15, %cst_11 [2] : vector<2x16x16xf32> to vector<2x16xf32>
    %17 = vector.shape_cast %16 : vector<2x16xf32> to vector<2x16x1xf32>
    %18 = tpu.reciprocal %17 {approx = true} : vector<2x16x1xf32> -> vector<2x16x1xf32>
    %19 = vector.broadcast %18 : vector<2x16x1xf32> to vector<2x16x16xf32>
    %20 = arith.mulf %15, %19 : vector<2x16x16xf32>
    %21 = arith.truncf %20 : vector<2x16x16xf32> to vector<2x16x16xbf16>
    "tpu.trace_start"() <{level = 10 : i32, message = "bqk,bkd->bqd"}> : () -> ()
    %cst_12 = arith.constant dense<0.000000e+00> : vector<2x16x128xf32>
    %22 = tpu.matmul %21, %2, %cst_12 {dimension_numbers = #tpu.dot_dimension_numbers<[2], [1], [1], [2], [0, 0, 0, 1, 1, 2], [0], [0]>} : vector<2x16x16xbf16>, vector<2x16x128xbf16>, vector<2x16x128xf32> -> vector<2x16x128xf32>
    "tpu.trace_stop"() : () -> ()
    %c0_13 = arith.constant 0 : index
    %c0_14 = arith.constant 0 : index
    %23 = vector.load %arg5[%c0_13, %c0_14] : memref<128x128xbf16, #tpu.memory_space<vmem>>, vector<128x128xbf16>
    %24 = vector.shape_cast %23 : vector<128x128xbf16> to vector<1x128x128xbf16>
    %25 = vector.broadcast %24 : vector<1x128x128xbf16> to vector<2x128x128xbf16>
    %26 = arith.truncf %22 : vector<2x16x128xf32> to vector<2x16x128xbf16>
    "tpu.trace_start"() <{level = 10 : i32, message = "bqd,bde->bqe"}> : () -> ()
    %cst_15 = arith.constant dense<0.000000e+00> : vector<2x16x128xf32>
    %27 = tpu.matmul %26, %25, %cst_15 {dimension_numbers = #tpu.dot_dimension_numbers<[2], [1], [1], [2], [0, 0, 0, 1, 1, 2], [0], [0]>} : vector<2x16x128xbf16>, vector<2x128x128xbf16>, vector<2x16x128xf32> -> vector<2x16x128xf32>
    "tpu.trace_stop"() : () -> ()
    %c0_16 = arith.constant 0 : index
    %c0_17 = arith.constant 0 : index
    %c0_18 = arith.constant 0 : index
    %28 = vector.load %arg1[%c0_16, %c0_17, %c0_18] : memref<2x16x128xf32, #tpu.memory_space<vmem>>, vector<2x16x128xf32>
    %29 = arith.addf %28, %27 : vector<2x16x128xf32>
    %c0_19 = arith.constant 0 : index
    %c0_20 = arith.constant 0 : index
    %30 = vector.load %arg6[%c0_19, %c0_20] : memref<1x128xf32, #tpu.memory_space<vmem>>, vector<1x128xf32>
    %31 = vector.shape_cast %30 : vector<1x128xf32> to vector<1x1x128xf32>
    %32 = vector.broadcast %31 : vector<1x1x128xf32> to vector<2x16x128xf32>
    %33 = arith.addf %29, %32 : vector<2x16x128xf32>
    %cst_21 = arith.constant dense<0.000000e+00> : vector<2x16xf32>
    %34 = vector.multi_reduction <add>, %33, %cst_21 [2] : vector<2x16x128xf32> to vector<2x16xf32>
    %35 = vector.shape_cast %34 : vector<2x16xf32> to vector<2x16x1xf32>
    %cst_22 = arith.constant 3.125000e-02 : f32
    %36 = vector.broadcast %cst_22 : f32 to vector<2x16x1xf32>
    %37 = arith.mulf %35, %36 : vector<2x16x1xf32>
    %38 = vector.broadcast %37 : vector<2x16x1xf32> to vector<2x16x128xf32>
    %39 = arith.subf %33, %38 : vector<2x16x128xf32>
    %40 = tpu.iota {dimensions = array<i32: 2>} : vector<2x16x128xi32>
    %c32_i32 = arith.constant 32 : i32
    %41 = vector.broadcast %c32_i32 : i32 to vector<2x16x128xi32>
    %42 = arith.cmpi slt, %40, %41 : vector<2x16x128xi32>
    %cst_23 = arith.constant 0.000000e+00 : f32
    %43 = vector.broadcast %cst_23 : f32 to vector<2x16x128xf32>
    %44 = arith.select %42, %39, %43 : vector<2x16x128xi1>, vector<2x16x128xf32>
    %45 = arith.mulf %44, %44 : vector<2x16x128xf32>
    %cst_24 = arith.constant dense<0.000000e+00> : vector<2x16xf32>
    %46 = vector.multi_reduction <add>, %45, %cst_24 [2] : vector<2x16x128xf32> to vector<2x16xf32>
    %47 = vector.shape_cast %46 : vector<2x16xf32> to vector<2x16x1xf32>
    %cst_25 = arith.constant 3.125000e-02 : f32
    %48 = vector.broadcast %cst_25 : f32 to vector<2x16x1xf32>
    %49 = arith.mulf %47, %48 : vector<2x16x1xf32>
    %cst_26 = arith.constant 9.99999974E-6 : f32
    %50 = vector.broadcast %cst_26 : f32 to vector<2x16x1xf32>
    %51 = arith.addf %49, %50 : vector<2x16x1xf32>
    %52 = math.rsqrt %51 : vector<2x16x1xf32>
    %53 = vector.broadcast %52 : vector<2x16x1xf32> to vector<2x16x128xf32>
    %54 = arith.mulf %44, %53 : vector<2x16x128xf32>
    %c0_27 = arith.constant 0 : index
    %c0_28 = arith.constant 0 : index
    %55 = vector.load %arg7[%c0_27, %c0_28] : memref<1x128xf32, #tpu.memory_space<vmem>>, vector<1x128xf32>
    %56 = vector.shape_cast %55 : vector<1x128xf32> to vector<1x1x128xf32>
    %57 = vector.broadcast %56 : vector<1x1x128xf32> to vector<2x16x128xf32>
    %58 = arith.mulf %54, %57 : vector<2x16x128xf32>
    %c0_29 = arith.constant 0 : index
    %c0_30 = arith.constant 0 : index
    %59 = vector.load %arg8[%c0_29, %c0_30] : memref<1x128xf32, #tpu.memory_space<vmem>>, vector<1x128xf32>
    %60 = vector.shape_cast %59 : vector<1x128xf32> to vector<1x1x128xf32>
    %61 = vector.broadcast %60 : vector<1x1x128xf32> to vector<2x16x128xf32>
    %62 = arith.addf %58, %61 : vector<2x16x128xf32>
    %63 = arith.truncf %62 : vector<2x16x128xf32> to vector<2x16x128xbf16>
    %c0_31 = arith.constant 0 : index
    %c0_32 = arith.constant 0 : index
    %c0_33 = arith.constant 0 : index
    %64 = vector.load %arg9[%c0_31, %c0_32, %c0_33] : memref<2x16x128xbf16, #tpu.memory_space<vmem>>, vector<2x16x128xbf16>
    tpu.vector_store %arg9[%c0_31, %c0_32, %c0_33], %63 {strides = array<i32>} : memref<2x16x128xbf16, #tpu.memory_space<vmem>>, vector<2x16x128xbf16>,
    return
  }
  func.func @transform_0(%arg0: i32) -> (i32, i32, i32) {
    %c0_i32 = arith.constant 0 : i32
    %c0_i32_0 = arith.constant 0 : i32
    %c0_i32_1 = arith.constant 0 : i32
    return %arg0, %c0_i32, %c0_i32_0 : i32, i32, i32
  }
  func.func @transform_1(%arg0: i32) -> (i32, i32, i32) {
    %c0_i32 = arith.constant 0 : i32
    %c0_i32_0 = arith.constant 0 : i32
    %c0_i32_1 = arith.constant 0 : i32
    return %arg0, %c0_i32, %c0_i32_0 : i32, i32, i32
  }
  func.func @transform_2(%arg0: i32) -> (i32, i32, i32) {
    %c0_i32 = arith.constant 0 : i32
    %c1_i32 = arith.constant 1 : i32
    %c0_i32_0 = arith.constant 0 : i32
    return %arg0, %c0_i32, %c1_i32 : i32, i32, i32
  }
  func.func @transform_3(%arg0: i32) -> (i32, i32, i32) {
    %c0_i32 = arith.constant 0 : i32
    %c2_i32 = arith.constant 2 : i32
    %c0_i32_0 = arith.constant 0 : i32
    return %arg0, %c0_i32, %c2_i32 : i32, i32, i32
  }
  func.func @transform_4(%arg0: i32) -> (i32, i32) {
    %c0_i32 = arith.constant 0 : i32
    %c0_i32_0 = arith.constant 0 : i32
    %c0_i32_1 = arith.constant 0 : i32
    return %c0_i32, %c0_i32_0 : i32, i32
  }
  func.func @transform_5(%arg0: i32) -> (i32, i32) {
    %c0_i32 = arith.constant 0 : i32
    %c0_i32_0 = arith.constant 0 : i32
    %c0_i32_1 = arith.constant 0 : i32
    return %c0_i32, %c0_i32_0 : i32, i32
  }
  func.func @transform_6(%arg0: i32) -> (i32, i32) {
    %c0_i32 = arith.constant 0 : i32
    %c0_i32_0 = arith.constant 0 : i32
    %c0_i32_1 = arith.constant 0 : i32
    return %c0_i32, %c0_i32_0 : i32, i32
  }
  func.func @transform_7(%arg0: i32) -> (i32, i32) {
    %c0_i32 = arith.constant 0 : i32
    %c0_i32_0 = arith.constant 0 : i32
    %c0_i32_1 = arith.constant 0 : i32
    return %c0_i32, %c0_i32_0 : i32, i32
  }
  func.func @transform_8(%arg0: i32) -> (i32, i32, i32) {
    %c0_i32 = arith.constant 0 : i32
    %c0_i32_0 = arith.constant 0 : i32
    %c0_i32_1 = arith.constant 0 : i32
    return %arg0, %c0_i32, %c0_i32_0 : i32, i32, i32
  }
}

module attributes {stable_mosaic.version = 11 : i64} {
  func.func @_matmul_kernel(%arg0: i32, %arg1: i32, %arg2: i32, %arg3: memref<32x128xbf16, #tpu.memory_space<vmem>>, %arg4: memref<128x512xbf16, #tpu.memory_space<vmem>>, %arg5: memref<1x512xf32, #tpu.memory_space<vmem>>, %arg6: memref<32x512xbf16, #tpu.memory_space<vmem>>, %arg7: memref<32x512xf32, #tpu.memory_space<vmem>>) attributes {dimension_semantics = [#tpu.dimension_semantics<parallel>, #tpu.dimension_semantics<parallel>, #tpu.dimension_semantics<arbitrary>], iteration_bounds = array<i64: 1, 4, 1>, scalar_prefetch = 0 : i64, scratch_operands = 1 : i64, tpu.core_type = #tpu.core_type<tc>, window_params = [{transform_indices = @transform_0, window_bounds = array<i64: 32, 128>}, {transform_indices = @transform_1, window_bounds = array<i64: 128, 512>}, {transform_indices = @transform_2, window_bounds = array<i64: 1, 512>}, {transform_indices = @transform_3, window_bounds = array<i64: 32, 512>}]} {
    %c0_i32 = arith.constant 0 : i32
    %0 = arith.cmpi eq, %arg2, %c0_i32 : i32
    %1 = arith.extui %0 : i1 to i32
    %c0_i32_0 = arith.constant 0 : i32
    %2 = arith.cmpi ne, %1, %c0_i32_0 : i32
    scf.if %2 {
      %cst_10 = arith.constant 0.000000e+00 : f32
      %12 = vector.broadcast %cst_10 : f32 to vector<32x512xf32>
      %c0_11 = arith.constant 0 : index
      %c0_12 = arith.constant 0 : index
      %13 = vector.load %arg7[%c0_11, %c0_12] : memref<32x512xf32, #tpu.memory_space<vmem>>, vector<32x512xf32>
      tpu.vector_store %arg7[%c0_11, %c0_12], %12 {strides = array<i32>} : memref<32x512xf32, #tpu.memory_space<vmem>>, vector<32x512xf32>,
    } else {
    }
    %c0 = arith.constant 0 : index
    %c0_1 = arith.constant 0 : index
    %3 = vector.load %arg7[%c0, %c0_1] : memref<32x512xf32, #tpu.memory_space<vmem>>, vector<32x512xf32>
    %c0_2 = arith.constant 0 : index
    %c0_3 = arith.constant 0 : index
    %4 = vector.load %arg3[%c0_2, %c0_3] : memref<32x128xbf16, #tpu.memory_space<vmem>>, vector<32x128xbf16>
    %c0_4 = arith.constant 0 : index
    %c0_5 = arith.constant 0 : index
    %5 = vector.load %arg4[%c0_4, %c0_5] : memref<128x512xbf16, #tpu.memory_space<vmem>>, vector<128x512xbf16>
    %cst = arith.constant dense<0.000000e+00> : vector<32x512xf32>
    %6 = tpu.matmul %4, %5, %cst {dimension_numbers = #tpu.dot_dimension_numbers<[1], [0], [0], [1], [0, 0, 1, 1], [], []>} : vector<32x128xbf16>, vector<128x512xbf16>, vector<32x512xf32> -> vector<32x512xf32>
    %7 = arith.addf %3, %6 : vector<32x512xf32>
    %c0_6 = arith.constant 0 : index
    %c0_7 = arith.constant 0 : index
    %8 = vector.load %arg7[%c0_6, %c0_7] : memref<32x512xf32, #tpu.memory_space<vmem>>, vector<32x512xf32>
    tpu.vector_store %arg7[%c0_6, %c0_7], %7 {strides = array<i32>} : memref<32x512xf32, #tpu.memory_space<vmem>>, vector<32x512xf32>,
    %c0_i32_8 = arith.constant 0 : i32
    %9 = arith.cmpi eq, %arg2, %c0_i32_8 : i32
    %10 = arith.extui %9 : i1 to i32
    %c0_i32_9 = arith.constant 0 : i32
    %11 = arith.cmpi ne, %10, %c0_i32_9 : i32
    scf.if %11 {
      %c0_10 = arith.constant 0 : index
      %c0_11 = arith.constant 0 : index
      %12 = vector.load %arg7[%c0_10, %c0_11] : memref<32x512xf32, #tpu.memory_space<vmem>>, vector<32x512xf32>
      %c0_12 = arith.constant 0 : index
      %c0_13 = arith.constant 0 : index
      %13 = vector.load %arg5[%c0_12, %c0_13] : memref<1x512xf32, #tpu.memory_space<vmem>>, vector<1x512xf32>
      %14 = vector.broadcast %13 : vector<1x512xf32> to vector<32x512xf32>
      %15 = arith.addf %12, %14 : vector<32x512xf32>
      %cst_14 = arith.constant 0.000000e+00 : f32
      %16 = vector.broadcast %cst_14 : f32 to vector<32x512xf32>
      %17 = arith.maximumf %15, %16 : vector<32x512xf32>
      %18 = arith.truncf %17 : vector<32x512xf32> to vector<32x512xbf16>
      %c0_15 = arith.constant 0 : index
      %c0_16 = arith.constant 0 : index
      %19 = vector.load %arg6[%c0_15, %c0_16] : memref<32x512xbf16, #tpu.memory_space<vmem>>, vector<32x512xbf16>
      tpu.vector_store %arg6[%c0_15, %c0_16], %18 {strides = array<i32>} : memref<32x512xbf16, #tpu.memory_space<vmem>>, vector<32x512xbf16>,
    } else {
    }
    return
  }
  func.func @transform_0(%arg0: i32, %arg1: i32, %arg2: i32) -> (i32, i32) {
    %c0_i32 = arith.constant 0 : i32
    return %arg0, %arg2 : i32, i32
  }
  func.func @transform_1(%arg0: i32, %arg1: i32, %arg2: i32) -> (i32, i32) {
    %c0_i32 = arith.constant 0 : i32
    return %arg2, %arg1 : i32, i32
  }
  func.func @transform_2(%arg0: i32, %arg1: i32, %arg2: i32) -> (i32, i32) {
    %c0_i32 = arith.constant 0 : i32
    %c0_i32_0 = arith.constant 0 : i32
    return %c0_i32, %arg1 : i32, i32
  }
  func.func @transform_3(%arg0: i32, %arg1: i32, %arg2: i32) -> (i32, i32) {
    %c0_i32 = arith.constant 0 : i32
    return %arg0, %arg1 : i32, i32
  }
}

module attributes {stable_mosaic.version = 11 : i64} {
  func.func @_ffn2_resln_kernel(%arg0: i32, %arg1: i32, %arg2: memref<32x512xbf16, #tpu.memory_space<vmem>>, %arg3: memref<512x128xbf16, #tpu.memory_space<vmem>>, %arg4: memref<1x128xf32, #tpu.memory_space<vmem>>, %arg5: memref<32x128xbf16, #tpu.memory_space<vmem>>, %arg6: memref<1x128xf32, #tpu.memory_space<vmem>>, %arg7: memref<1x128xf32, #tpu.memory_space<vmem>>, %arg8: memref<32x128xbf16, #tpu.memory_space<vmem>>, %arg9: memref<32x128xf32, #tpu.memory_space<vmem>>) attributes {dimension_semantics = [#tpu.dimension_semantics<parallel>, #tpu.dimension_semantics<arbitrary>], iteration_bounds = array<i64: 1, 4>, scalar_prefetch = 0 : i64, scratch_operands = 1 : i64, tpu.core_type = #tpu.core_type<tc>, window_params = [{transform_indices = @transform_0, window_bounds = array<i64: 32, 512>}, {transform_indices = @transform_1, window_bounds = array<i64: 512, 128>}, {pipeline_mode = #tpu.pipeline_mode<synchronous>, transform_indices = @transform_2, window_bounds = array<i64: 1, 128>}, {transform_indices = @transform_3, window_bounds = array<i64: 32, 128>}, {pipeline_mode = #tpu.pipeline_mode<synchronous>, transform_indices = @transform_4, window_bounds = array<i64: 1, 128>}, {pipeline_mode = #tpu.pipeline_mode<synchronous>, transform_indices = @transform_5, window_bounds = array<i64: 1, 128>}, {transform_indices = @transform_6, window_bounds = array<i64: 32, 128>}]} {
    %c0_i32 = arith.constant 0 : i32
    %0 = arith.cmpi eq, %arg1, %c0_i32 : i32
    %1 = arith.extui %0 : i1 to i32
    %c0_i32_0 = arith.constant 0 : i32
    %2 = arith.cmpi ne, %1, %c0_i32_0 : i32
    scf.if %2 {
      %cst_9 = arith.constant 0.000000e+00 : f32
      %12 = vector.broadcast %cst_9 : f32 to vector<32x128xf32>
      %c0_10 = arith.constant 0 : index
      %c0_11 = arith.constant 0 : index
      %13 = vector.load %arg9[%c0_10, %c0_11] : memref<32x128xf32, #tpu.memory_space<vmem>>, vector<32x128xf32>
      tpu.vector_store %arg9[%c0_10, %c0_11], %12 {strides = array<i32>} : memref<32x128xf32, #tpu.memory_space<vmem>>, vector<32x128xf32>,
    } else {
    }
    %c0 = arith.constant 0 : index
    %c0_1 = arith.constant 0 : index
    %3 = vector.load %arg9[%c0, %c0_1] : memref<32x128xf32, #tpu.memory_space<vmem>>, vector<32x128xf32>
    %c0_2 = arith.constant 0 : index
    %c0_3 = arith.constant 0 : index
    %4 = vector.load %arg2[%c0_2, %c0_3] : memref<32x512xbf16, #tpu.memory_space<vmem>>, vector<32x512xbf16>
    %c0_4 = arith.constant 0 : index
    %c0_5 = arith.constant 0 : index
    %5 = vector.load %arg3[%c0_4, %c0_5] : memref<512x128xbf16, #tpu.memory_space<vmem>>, vector<512x128xbf16>
    %cst = arith.constant dense<0.000000e+00> : vector<32x128xf32>
    %6 = tpu.matmul %4, %5, %cst {dimension_numbers = #tpu.dot_dimension_numbers<[1], [0], [0], [1], [0, 0, 1, 1], [], []>} : vector<32x512xbf16>, vector<512x128xbf16>, vector<32x128xf32> -> vector<32x128xf32>
    %7 = arith.addf %3, %6 : vector<32x128xf32>
    %c0_6 = arith.constant 0 : index
    %c0_7 = arith.constant 0 : index
    %8 = vector.load %arg9[%c0_6, %c0_7] : memref<32x128xf32, #tpu.memory_space<vmem>>, vector<32x128xf32>
    tpu.vector_store %arg9[%c0_6, %c0_7], %7 {strides = array<i32>} : memref<32x128xf32, #tpu.memory_space<vmem>>, vector<32x128xf32>,
    %c3_i32 = arith.constant 3 : i32
    %9 = arith.cmpi eq, %arg1, %c3_i32 : i32
    %10 = arith.extui %9 : i1 to i32
    %c0_i32_8 = arith.constant 0 : i32
    %11 = arith.cmpi ne, %10, %c0_i32_8 : i32
    scf.if %11 {
      %c0_9 = arith.constant 0 : index
      %c0_10 = arith.constant 0 : index
      %12 = vector.load %arg9[%c0_9, %c0_10] : memref<32x128xf32, #tpu.memory_space<vmem>>, vector<32x128xf32>
      %c0_11 = arith.constant 0 : index
      %c0_12 = arith.constant 0 : index
      %13 = vector.load %arg4[%c0_11, %c0_12] : memref<1x128xf32, #tpu.memory_space<vmem>>, vector<1x128xf32>
      %14 = vector.broadcast %13 : vector<1x128xf32> to vector<32x128xf32>
      %15 = arith.addf %12, %14 : vector<32x128xf32>
      %c0_13 = arith.constant 0 : index
      %c0_14 = arith.constant 0 : index
      %16 = vector.load %arg5[%c0_13, %c0_14] : memref<32x128xbf16, #tpu.memory_space<vmem>>, vector<32x128xbf16>
      %17 = arith.extf %16 : vector<32x128xbf16> to vector<32x128xf32>
      %18 = arith.addf %15, %17 : vector<32x128xf32>
      %cst_15 = arith.constant dense<0.000000e+00> : vector<32xf32>
      %19 = vector.multi_reduction <add>, %18, %cst_15 [1] : vector<32x128xf32> to vector<32xf32>
      %20 = vector.shape_cast %19 : vector<32xf32> to vector<32x1xf32>
      %cst_16 = arith.constant 3.125000e-02 : f32
      %21 = vector.broadcast %cst_16 : f32 to vector<32x1xf32>
      %22 = arith.mulf %20, %21 : vector<32x1xf32>
      %23 = vector.broadcast %22 : vector<32x1xf32> to vector<32x128xf32>
      %24 = arith.subf %18, %23 : vector<32x128xf32>
      %25 = tpu.iota {dimensions = array<i32: 1>} : vector<32x128xi32>
      %c32_i32 = arith.constant 32 : i32
      %26 = vector.broadcast %c32_i32 : i32 to vector<32x128xi32>
      %27 = arith.cmpi slt, %25, %26 : vector<32x128xi32>
      %cst_17 = arith.constant 0.000000e+00 : f32
      %28 = vector.broadcast %cst_17 : f32 to vector<32x128xf32>
      %29 = arith.select %27, %24, %28 : vector<32x128xi1>, vector<32x128xf32>
      %30 = arith.mulf %29, %29 : vector<32x128xf32>
      %cst_18 = arith.constant dense<0.000000e+00> : vector<32xf32>
      %31 = vector.multi_reduction <add>, %30, %cst_18 [1] : vector<32x128xf32> to vector<32xf32>
      %32 = vector.shape_cast %31 : vector<32xf32> to vector<32x1xf32>
      %cst_19 = arith.constant 3.125000e-02 : f32
      %33 = vector.broadcast %cst_19 : f32 to vector<32x1xf32>
      %34 = arith.mulf %32, %33 : vector<32x1xf32>
      %cst_20 = arith.constant 9.99999974E-6 : f32
      %35 = vector.broadcast %cst_20 : f32 to vector<32x1xf32>
      %36 = arith.addf %34, %35 : vector<32x1xf32>
      %37 = math.rsqrt %36 : vector<32x1xf32>
      %38 = vector.broadcast %37 : vector<32x1xf32> to vector<32x128xf32>
      %39 = arith.mulf %29, %38 : vector<32x128xf32>
      %c0_21 = arith.constant 0 : index
      %c0_22 = arith.constant 0 : index
      %40 = vector.load %arg6[%c0_21, %c0_22] : memref<1x128xf32, #tpu.memory_space<vmem>>, vector<1x128xf32>
      %41 = vector.broadcast %40 : vector<1x128xf32> to vector<32x128xf32>
      %42 = arith.mulf %39, %41 : vector<32x128xf32>
      %c0_23 = arith.constant 0 : index
      %c0_24 = arith.constant 0 : index
      %43 = vector.load %arg7[%c0_23, %c0_24] : memref<1x128xf32, #tpu.memory_space<vmem>>, vector<1x128xf32>
      %44 = vector.broadcast %43 : vector<1x128xf32> to vector<32x128xf32>
      %45 = arith.addf %42, %44 : vector<32x128xf32>
      %46 = arith.truncf %45 : vector<32x128xf32> to vector<32x128xbf16>
      %c0_25 = arith.constant 0 : index
      %c0_26 = arith.constant 0 : index
      %47 = vector.load %arg8[%c0_25, %c0_26] : memref<32x128xbf16, #tpu.memory_space<vmem>>, vector<32x128xbf16>
      tpu.vector_store %arg8[%c0_25, %c0_26], %46 {strides = array<i32>} : memref<32x128xbf16, #tpu.memory_space<vmem>>, vector<32x128xbf16>,
    } else {
    }
    return
  }
  func.func @transform_0(%arg0: i32, %arg1: i32) -> (i32, i32) {
    %c0_i32 = arith.constant 0 : i32
    return %arg0, %arg1 : i32, i32
  }
  func.func @transform_1(%arg0: i32, %arg1: i32) -> (i32, i32) {
    %c0_i32 = arith.constant 0 : i32
    %c0_i32_0 = arith.constant 0 : i32
    return %arg1, %c0_i32 : i32, i32
  }
  func.func @transform_2(%arg0: i32, %arg1: i32) -> (i32, i32) {
    %c0_i32 = arith.constant 0 : i32
    %c0_i32_0 = arith.constant 0 : i32
    %c0_i32_1 = arith.constant 0 : i32
    return %c0_i32, %c0_i32_0 : i32, i32
  }
  func.func @transform_3(%arg0: i32, %arg1: i32) -> (i32, i32) {
    %c0_i32 = arith.constant 0 : i32
    %c0_i32_0 = arith.constant 0 : i32
    return %arg0, %c0_i32 : i32, i32
  }
  func.func @transform_4(%arg0: i32, %arg1: i32) -> (i32, i32) {
    %c0_i32 = arith.constant 0 : i32
    %c0_i32_0 = arith.constant 0 : i32
    %c0_i32_1 = arith.constant 0 : i32
    return %c0_i32, %c0_i32_0 : i32, i32
  }
  func.func @transform_5(%arg0: i32, %arg1: i32) -> (i32, i32) {
    %c0_i32 = arith.constant 0 : i32
    %c0_i32_0 = arith.constant 0 : i32
    %c0_i32_1 = arith.constant 0 : i32
    return %c0_i32, %c0_i32_0 : i32, i32
  }
  func.func @transform_6(%arg0: i32, %arg1: i32) -> (i32, i32) {
    %c0_i32 = arith.constant 0 : i32
    %c0_i32_0 = arith.constant 0 : i32
    return %arg0, %c0_i32 : i32, i32
  }
}

module attributes {stable_mosaic.version = 11 : i64} {
  func.func @_matmul_kernel(%arg0: i32, %arg1: i32, %arg2: i32, %arg3: memref<32x128xbf16, #tpu.memory_space<vmem>>, %arg4: memref<128x128xbf16, #tpu.memory_space<vmem>>, %arg5: memref<1x128xf32, #tpu.memory_space<vmem>>, %arg6: memref<32x128xf32, #tpu.memory_space<vmem>>, %arg7: memref<32x128xf32, #tpu.memory_space<vmem>>) attributes {dimension_semantics = [#tpu.dimension_semantics<parallel>, #tpu.dimension_semantics<parallel>, #tpu.dimension_semantics<arbitrary>], iteration_bounds = array<i64: 1, 1, 1>, scalar_prefetch = 0 : i64, scratch_operands = 1 : i64, tpu.core_type = #tpu.core_type<tc>, window_params = [{transform_indices = @transform_0, window_bounds = array<i64: 32, 128>}, {transform_indices = @transform_1, window_bounds = array<i64: 128, 128>}, {transform_indices = @transform_2, window_bounds = array<i64: 1, 128>}, {transform_indices = @transform_3, window_bounds = array<i64: 32, 128>}]} {
    %c0_i32 = arith.constant 0 : i32
    %0 = arith.cmpi eq, %arg2, %c0_i32 : i32
    %1 = arith.extui %0 : i1 to i32
    %c0_i32_0 = arith.constant 0 : i32
    %2 = arith.cmpi ne, %1, %c0_i32_0 : i32
    scf.if %2 {
      %cst_10 = arith.constant 0.000000e+00 : f32
      %12 = vector.broadcast %cst_10 : f32 to vector<32x128xf32>
      %c0_11 = arith.constant 0 : index
      %c0_12 = arith.constant 0 : index
      %13 = vector.load %arg7[%c0_11, %c0_12] : memref<32x128xf32, #tpu.memory_space<vmem>>, vector<32x128xf32>
      tpu.vector_store %arg7[%c0_11, %c0_12], %12 {strides = array<i32>} : memref<32x128xf32, #tpu.memory_space<vmem>>, vector<32x128xf32>,
    } else {
    }
    %c0 = arith.constant 0 : index
    %c0_1 = arith.constant 0 : index
    %3 = vector.load %arg7[%c0, %c0_1] : memref<32x128xf32, #tpu.memory_space<vmem>>, vector<32x128xf32>
    %c0_2 = arith.constant 0 : index
    %c0_3 = arith.constant 0 : index
    %4 = vector.load %arg3[%c0_2, %c0_3] : memref<32x128xbf16, #tpu.memory_space<vmem>>, vector<32x128xbf16>
    %c0_4 = arith.constant 0 : index
    %c0_5 = arith.constant 0 : index
    %5 = vector.load %arg4[%c0_4, %c0_5] : memref<128x128xbf16, #tpu.memory_space<vmem>>, vector<128x128xbf16>
    %cst = arith.constant dense<0.000000e+00> : vector<32x128xf32>
    %6 = tpu.matmul %4, %5, %cst {dimension_numbers = #tpu.dot_dimension_numbers<[1], [0], [0], [1], [0, 0, 1, 1], [], []>} : vector<32x128xbf16>, vector<128x128xbf16>, vector<32x128xf32> -> vector<32x128xf32>
    %7 = arith.addf %3, %6 : vector<32x128xf32>
    %c0_6 = arith.constant 0 : index
    %c0_7 = arith.constant 0 : index
    %8 = vector.load %arg7[%c0_6, %c0_7] : memref<32x128xf32, #tpu.memory_space<vmem>>, vector<32x128xf32>
    tpu.vector_store %arg7[%c0_6, %c0_7], %7 {strides = array<i32>} : memref<32x128xf32, #tpu.memory_space<vmem>>, vector<32x128xf32>,
    %c0_i32_8 = arith.constant 0 : i32
    %9 = arith.cmpi eq, %arg2, %c0_i32_8 : i32
    %10 = arith.extui %9 : i1 to i32
    %c0_i32_9 = arith.constant 0 : i32
    %11 = arith.cmpi ne, %10, %c0_i32_9 : i32
    scf.if %11 {
      %c0_10 = arith.constant 0 : index
      %c0_11 = arith.constant 0 : index
      %12 = vector.load %arg7[%c0_10, %c0_11] : memref<32x128xf32, #tpu.memory_space<vmem>>, vector<32x128xf32>
      %c0_12 = arith.constant 0 : index
      %c0_13 = arith.constant 0 : index
      %13 = vector.load %arg5[%c0_12, %c0_13] : memref<1x128xf32, #tpu.memory_space<vmem>>, vector<1x128xf32>
      %14 = vector.broadcast %13 : vector<1x128xf32> to vector<32x128xf32>
      %15 = arith.addf %12, %14 : vector<32x128xf32>
      %c0_14 = arith.constant 0 : index
      %c0_15 = arith.constant 0 : index
      %16 = vector.load %arg6[%c0_14, %c0_15] : memref<32x128xf32, #tpu.memory_space<vmem>>, vector<32x128xf32>
      tpu.vector_store %arg6[%c0_14, %c0_15], %15 {strides = array<i32>} : memref<32x128xf32, #tpu.memory_space<vmem>>, vector<32x128xf32>,
    } else {
    }
    return
  }
  func.func @transform_0(%arg0: i32, %arg1: i32, %arg2: i32) -> (i32, i32) {
    %c0_i32 = arith.constant 0 : i32
    return %arg0, %arg2 : i32, i32
  }
  func.func @transform_1(%arg0: i32, %arg1: i32, %arg2: i32) -> (i32, i32) {
    %c0_i32 = arith.constant 0 : i32
    return %arg2, %arg1 : i32, i32
  }
  func.func @transform_2(%arg0: i32, %arg1: i32, %arg2: i32) -> (i32, i32) {
    %c0_i32 = arith.constant 0 : i32
    %c0_i32_0 = arith.constant 0 : i32
    return %c0_i32, %arg1 : i32, i32
  }
  func.func @transform_3(%arg0: i32, %arg1: i32, %arg2: i32) -> (i32, i32) {
    %c0_i32 = arith.constant 0 : i32
    return %arg0, %arg1 : i32, i32
  }
}

</mosaic_0001>

<bundles_post_ra>
// kernel: seq_context.6
= control target key start
LH: loop header
LB: loop body
LE: loop exit
PB: predicated region body
PF: predicated region fallthrough
CT: control target
= control target key end

     0   :  { %13 = vsyncpa [#allocation6], 0  ;;  %s1293_s0 = inlined_call_operand.vmem [shape: f32[2,16,128], index: 0, kind: input, shape index: {}]   ;;  %s1294_s1 = inlined_call_operand.vmem [shape: bf16[2,16,384], index: 1, kind: input, shape index: {}, may-alias: {1,2,3}]   ;;  %s1295_s2 = inlined_call_operand.vmem [shape: bf16[2,16,384], index: 2, kind: input, shape index: {}, may-alias: {1,2,3}]   ;;  %s1296_s3 = inlined_call_operand.vmem [shape: bf16[2,16,384], index: 3, kind: input, shape index: {}, may-alias: {1,2,3}]   ;;  %s1297_s4 = inlined_call_operand.hbm [shape: bf16[128,128], index: 4, kind: input, shape index: {}]   ;;  %s1298_s5 = inlined_call_operand.hbm [shape: f32[1,128], index: 5, kind: input, shape index: {}]   ;;  %s1299_s6 = inlined_call_operand.hbm [shape: f32[1,128], index: 6, kind: input, shape index: {}]   ;;  %s1300_s7 = inlined_call_operand.hbm [shape: f32[1,128], index: 7, kind: input, shape index: {}]   ;;  %s1301_s8 = inlined_call_operand.vmem [shape: bf16[2,16,128], index: 8, kind: output, shape index: {}]  }
   0x1   :  { %14 = vsyncpa [#allocation8], 0  ;;  %v35_v0 = vld [vmem:[%s1294_s1] sm:$0xf]  ;;  %v37_v1 = vld [vmem:[%s1294_s1 + $0xc] sm:$0xf] }
   0x2   :  { %s1069_s9 = smov [#allocation7]   ;;  %36 = vst [vmem:[#allocation2] sm:$0xf] %v35_v0  ;;  %38 = vst [vmem:[#allocation2 + $0x4] sm:$0xf] %v37_v1  ;;  %s1070_s15 = smov [#allocation5]  }
   0x3   :  { %s197_s10 = sshll.u32 %s1069_s9, 4  ;;  %v39_v2 = vld [vmem:[%s1294_s1 + $0x18] sm:$0xf]  ;;  %v41_v3 = vld [vmem:[%s1294_s1 + $0x24] sm:$0xf]  ;;  %s184_s16 = sshll.u32 %s1070_s15, 4  ;;  %s198_s10 = int_to_ptr.vmem [resolvable:$true] %s197_s10  ;;  %s1143_s16 = int_to_ptr.vmem [resolvable:$true] %s184_s16 }
   0x4   :  { %40 = vst [vmem:[#allocation2 + $0x8] sm:$0xf] %v39_v2  ;;  %42 = vst [vmem:[#allocation2 + $0xc] sm:$0xf] %v41_v3  ;;  %v793_v4 = vld [vmem:[%s1295_s2 + $0x4] sm:$0xf] }
   0x5   :  { %v794_v5 = vld [vmem:[%s1295_s2 + $0x10] sm:$0xf]  ;;  %v795_v6 = vld [vmem:[%s1295_s2 + $0x1c] sm:$0xf]  ;;  %s975_s24 = scalar_lea.hbm %s1298_s5, 16 }
   0x6   :  { %p976_p0 = scmp.ne.s32.totalorder %s1298_s5, %s975_s24  ;;  %p979_p1 = scmp.lt.u32.totalorder %s975_s24, %s1298_s5 }
   0x8   :  { %p981_p2 = pnand %p979_p1, %p976_p0 }
   0xa   :  { %984 = shalt.err (!%p981_p2)
}
   0xb   :  { %s985_s29 = scalar_lea.vmem %s198_s10, 16  ;;  %s989_s30 = scalar_lea.vmem %s198_s10, 32 }
   0xc   :  { %p986_p3 = scmp.ne.s32.totalorder %s198_s10, %s985_s29  ;;  %p990_p4 = scmp.lt.s32.totalorder %s198_s10, %s198_s10 }
   0xd   :  { %p991_p5 = scmp.lt.s32.totalorder %s989_s30, %s985_s29 }
   0xf   :  { %p992_p6 = por %p991_p5, %p990_p4 }
  0x11   :  { %p993_p7 = pnand %p992_p6, %p986_p3 }
  0x13   :  { %996 = shalt.err (!%p993_p7)
}
  0x14   :  { %200 = dma.hbm_to_vmem [thread:$0]  %s1298_s5, 16, %s198_s10, [#allocation8]   ;;  %90 = vst [vmem:[#allocation3] sm:$0xf] %v793_v4  ;;  %92 = vst [vmem:[#allocation3 + $0x4] sm:$0xf] %v794_v5 }
  0x15   :  { %94 = vst [vmem:[#allocation3 + $0x8] sm:$0xf] %v795_v6  ;;  %v796_v7 = vld [vmem:[%s1295_s2 + $0x28] sm:$0xf]  ;;  %v798_v9 = vld [vmem:[%s1296_s3 + $0x14] sm:$0xf] }
  0x16   :  { %v797_v8 = vld [vmem:[%s1296_s3 + $0x8] sm:$0xf]  ;;  %96 = vst [vmem:[#allocation3 + $0xc] sm:$0xf] %v796_v7  ;;  %v799_v10 = vld [vmem:[%s1296_s3 + $0x20] sm:$0xf] }
  0x17   :  { %144 = vst [vmem:[#allocation4] sm:$0xf] %v797_v8  ;;  %v800_v11 = vld [vmem:[%s1296_s3 + $0x2c] sm:$0xf]  ;;  %146 = vst [vmem:[#allocation4 + $0x4] sm:$0xf] %v798_v9 }
  0x18   :  { %148 = vst [vmem:[#allocation4 + $0x8] sm:$0xf] %v799_v10  ;;  %150 = vst [vmem:[#allocation4 + $0xc] sm:$0xf] %v800_v11 }
  0x19   :  { %15 = vsyncpa [#allocation11], 0  ;;  %s997_s22 = scalar_lea.hbm %s1297_s4, 1024 }
  0x1a   :  { %p998_p8 = scmp.ne.s32.totalorder %s1297_s4, %s997_s22  ;;  %p1001_p9 = scmp.lt.u32.totalorder %s997_s22, %s1297_s4 }
  0x1c   :  { %p1003_p10 = pnand %p1001_p9, %p998_p8 }
  0x1e   :  { %1006 = shalt.err (!%p1003_p10)
}
  0x1f   :  { %s1007_s3 = scalar_lea.vmem %s1143_s16, 1024  ;;  %p1012_p12 = scmp.lt.s32.totalorder %s1143_s16, %s1143_s16 }
  0x20   :  { %p1008_p11 = scmp.ne.s32.totalorder %s1143_s16, %s1007_s3  ;;  %p1013_p13 = scmp.lt.s32.totalorder %s1007_s3, %s1007_s3 }
  0x22   :  { %p1014_p0 = por %p1013_p13, %p1012_p12 }
  0x24   :  { %p1015_p1 = pnand %p1014_p0, %p1008_p11 }
  0x26   :  { %1018 = shalt.err (!%p1015_p1)
}
  0x27   :  { %s1071_s26 = smov 64   ;;  %s1072_s27 = smov 4  }
  0x28   :  { %190 = dma.hbm_to_vmem [thread:$0]  %s1297_s4, 1024, %s1143_s16, [#allocation6], %s1071_s26, %s1071_s26, %s1072_s27  }
  0x29   :  { %s1073_s30 = smov [#allocation9]   ;;  %s1074_s11 = smov [#allocation10]  }
  0x2a   :  { %s207_s9 = sshll.u32 %s1073_s30, 4  ;;  %s217_s12 = sshll.u32 %s1074_s11, 4  ;;  %s208_s9 = int_to_ptr.vmem [resolvable:$true] %s207_s9  ;;  %s218_s12 = int_to_ptr.vmem [resolvable:$true] %s217_s12 }
  0x2b   :  { %s1019_s15 = scalar_lea.hbm %s1299_s6, 16 }
  0x2c   :  { %p1020_p2 = scmp.ne.s32.totalorder %s1299_s6, %s1019_s15  ;;  %p1023_p3 = scmp.lt.u32.totalorder %s1019_s15, %s1299_s6 }
  0x2e   :  { %p1025_p4 = pnand %p1023_p3, %p1020_p2 }
  0x30   :  { %1028 = shalt.err (!%p1025_p4)
}
  0x31   :  { %s1029_s4 = scalar_lea.vmem %s208_s9, 16  ;;  %s1033_s16 = scalar_lea.vmem %s208_s9, 32 }
  0x32   :  { %p1030_p5 = scmp.ne.s32.totalorder %s208_s9, %s1029_s4  ;;  %p1034_p6 = scmp.lt.s32.totalorder %s208_s9, %s208_s9 }
  0x33   :  { %p1035_p7 = scmp.lt.s32.totalorder %s1033_s16, %s1029_s4 }
  0x35   :  { %p1036_p8 = por %p1035_p7, %p1034_p6 }
  0x37   :  { %p1037_p9 = pnand %p1036_p8, %p1030_p5 }
  0x39   :  { %1040 = shalt.err (!%p1037_p9)
}
  0x3a   :  { %210 = dma.hbm_to_vmem [thread:$0]  %s1299_s6, 16, %s208_s9, [#allocation8]  }
  0x3b   :  { %s1041_s22 = scalar_lea.hbm %s1300_s7, 16 }
  0x3c   :  { %p1042_p10 = scmp.ne.s32.totalorder %s1300_s7, %s1041_s22  ;;  %p1045_p11 = scmp.lt.u32.totalorder %s1041_s22, %s1300_s7 }
  0x3e   :  { %p1047_p12 = pnand %p1045_p11, %p1042_p10 }
  0x40   :  { %1050 = shalt.err (!%p1047_p12)
}
  0x41   :  { %s1051_s3 = scalar_lea.vmem %s218_s12, 16  ;;  %s1055_s26 = scalar_lea.vmem %s218_s12, 32 }
  0x42   :  { %p1052_p13 = scmp.ne.s32.totalorder %s218_s12, %s1051_s3  ;;  %p1056_p0 = scmp.lt.s32.totalorder %s218_s12, %s218_s12 }
  0x43   :  { %p1057_p1 = scmp.lt.s32.totalorder %s1055_s26, %s1051_s3 }
  0x45   :  { %p1058_p2 = por %p1057_p1, %p1056_p0 }
  0x47   :  { %p1059_p3 = pnand %p1058_p2, %p1052_p13 }
  0x49   :  { %1062 = shalt.err (!%p1059_p3)
}
  0x4a   :  { %220 = dma.hbm_to_vmem [thread:$0]  %s1300_s7, 16, %s218_s12, [#allocation11]  }
  0x4b   :  { %1063 = dma.done.wait [#allocation6], 1024  }
  0x4c   :  { %1064 = vsyncadd [#allocation6], 4294966272 }
  0x4d   :  { %1065 = dma.done.wait [#allocation8], 32  }
  0x4e   :  { %1066 = vsyncadd [#allocation8], 4294967264 }
  0x4f   :  { %1067 = dma.done.wait [#allocation11], 16  }
  0x50   :  { %1068 = vsyncadd [#allocation11], 4294967280  ;;  %v1075_v12 = vmov 0.0   ;;  %vm1076_vm0 = vmmov 0   ;;  %v937_v13 = vld [vmem:[#allocation3] sm:$0xff]   ;;  %v938_v14 = vld [vmem:[#allocation3 + $0x8] sm:$0xff]   ;;  %v362_v17 = vlaneseq }
  0x51   :  { %865 = vmatprep.subr.bf16.mxu0 %v1075_v12  ;;  %871 = vmatprep.subr.bf16.mxu1 %v1075_v12  ;;  %v939_v15 = vld [vmem:[#allocation2] sm:$0xff]   ;;  %v940_v16 = vld [vmem:[#allocation2 + $0x8] sm:$0xff]   ;;  %vm369_vm2 = vcmask 130048   ;;  %v943_v6 = vld [vmem:[#allocation5] sm:$0xff]  }
  0x52   :  { %867 = vmatprep.mubr.msk.bf16.mxu0 %vm1076_vm0, %v1075_v12  ;;  %873 = vmatprep.mubr.msk.bf16.mxu1 %vm1076_vm0, %v1075_v12  ;;  %v1225_v18 = vand.u32 127, %v362_v17  ;;  %v941_v59 = vld [vmem:[#allocation4] sm:$0xff]   ;;  %v942_v60 = vld [vmem:[#allocation4 + $0x8] sm:$0xff]   ;;  %v944_v11 = vld [vmem:[#allocation5 + $0x8] sm:$0xff]  }
  0x53   :  { %866 = vmatpush3.bf16.xpose.msra.mxu0 %v937_v13  ;;  %872 = vmatpush3.bf16.xpose.msra.mxu1 %v938_v14  ;;  %v945_v14 = vld [vmem:[#allocation5 + $0x10] sm:$0xff]   ;;  %v948_v17 = vld [vmem:[#allocation5 + $0x28] sm:$0xff]  }
  0x54   :  { %877 = vmatprep.subr.bf16.mxu0 %v1075_v12  ;;  %883 = vmatprep.subr.bf16.mxu1 %v1075_v12  ;;  %vm364_vm1 = vcmp.lt.s32.totalorder %v1225_v18, 8  ;;  %vm699_vm3 = vcmp.lt.s32.totalorder %v1225_v18, 32 }
  0x5a   :  { %868 = vmatmul.mubr.bf16.vlgmr.msra.gmra.mrb[0].mxu0 %v939_v15  ;;  %874 = vmatmul.mubr.bf16.vlgmr.msra.gmra.mrb[0].mxu1 %v940_v16  ;;  %v946_v15 = vld [vmem:[#allocation5 + $0x18] sm:$0xff]   ;;  %v947_v16 = vld [vmem:[#allocation5 + $0x20] sm:$0xff]  }
  0x5b   :  { %879 = vmatprep.mubr.msk.bf16.mxu0 %vm1076_vm0, %v1075_v12  ;;  %885 = vmatprep.mubr.msk.bf16.mxu1 %vm1076_vm0, %v1075_v12 }
  0x5c   :  { %878 = vmatpush3.bf16.msra.mxu0 %v941_v59  ;;  %884 = vmatpush3.bf16.msra.mxu1 %v942_v60 }
  0x5d   :  { %889 = vmatprep.subr.bf16.mxu0 %v1075_v12  ;;  %909 = vmatprep.subr.bf16.mxu1 %v1075_v12 }
 0x12d   :  { %v298_v19 = vpop.f32.mrb[0].mxu0  ;;  %v351_v21 = vpop.f32.mrb[0].mxu1 }
 0x12e   :  { %v358_v20 = vmul.f32 0.17677669, %v298_v19  ;;  %v869_v22 = vpop.f32.mrb[1].mxu0  ;;  %v360_v23 = vmul.f32 0.17677669, %v351_v21  ;;  %v875_v25 = vpop.f32.mrb[1].mxu1 }
 0x12f   :  { %v301_v24 = vpop.f32.mrb[2].mxu0  ;;  %v354_v28 = vpop.f32.mrb[2].mxu1  ;;  %v949_v19 = vld [vmem:[#allocation5 + $0x30] sm:$0xff]  }
 0x130   :  { %v359_v26 = vmul.f32 0.17677669, %v301_v24  ;;  %v870_v27 = vpop.f32.mrb[3].mxu0  ;;  %v365_v29 = vsel %vm364_vm1, %v358_v20, -1e+30  ;;  %v876_v31 = vpop.f32.mrb[3].mxu1 }
 0x131   :  { %v361_v30 = vmul.f32 0.17677669, %v354_v28  ;;  %v367_v32 = vsel %vm364_vm1, %v360_v23, -1e+30  ;;  %v370_v33 = vsel %vm369_vm2, %v365_v29, -inf  ;;  %v950_v20 = vld [vmem:[#allocation5 + $0x38] sm:$0xff]  }
 0x132   :  { %v376_v34 = vsel %vm369_vm2, %v367_v32, -inf  ;;  %371 = vmax.xlane.f32.xlu0 %v370_v33  ;;  %v366_v35 = vsel %vm364_vm1, %v359_v26, -1e+30  ;;  %v664_v31 = vld [vmem:[%s1293_s0] sm:$0xff]  ;;  %v817_v33 = vld [vmem:[#allocation7] ss:$0 sm:$0xff] }
 0x133   :  { %377 = vmax.xlane.f32.xlu1 %v376_v34  ;;  %v368_v36 = vsel %vm364_vm1, %v361_v30, -1e+30  ;;  %v373_v38 = vsel %vm369_vm2, %v366_v35, -inf }
 0x134   :  { %v379_v37 = vsel %vm369_vm2, %v368_v36, -inf }
 0x136   :  { %374 = vmax.xlane.f32.xlu0 %v373_v38 }
 0x137   :  { %380 = vmax.xlane.f32.xlu1 %v379_v37  ;;  %v666_v37 = vld [vmem:[%s1293_s0 + $0x10] sm:$0xff] }
 0x1bf   :  { %v372_v39 = vpop.xlane.xlu0 %371 }
 0x1c0   :  { %v378_v40 = vpop.xlane.xlu1 %377  ;;  %v382_v41 = vsub.f32 %v365_v29, %v372_v39 }
 0x1c1   :  { %v384_v42 = vsub.f32 %v367_v32, %v378_v40  ;;  %v665_v32 = vld [vmem:[%s1293_s0 + $0x8] sm:$0xff] }
 0x1c2   :  { %v386_v43 = vmul.f32 1.442695, %v382_v41 }
 0x1c3   :  { %v390_v44 = vmul.f32 1.442695, %v384_v42  ;;  %v375_v45 = vpop.xlane.xlu0 %374  ;;  %v667_v42 = vld [vmem:[%s1293_s0 + $0x18] sm:$0xff] }
 0x1c4   :  { %951 = vpow2.f32 %v386_v43  ;;  %v381_v46 = vpop.xlane.xlu1 %380  ;;  %v383_v47 = vsub.f32 %v366_v35, %v375_v45 }
 0x1c5   :  { %v385_v48 = vsub.f32 %v368_v36, %v381_v46  ;;  %953 = vpow2.f32 %v390_v44 }
 0x1c6   :  { %v388_v49 = vmul.f32 1.442695, %v383_v47 }
 0x1c7   :  { %v392_v50 = vmul.f32 1.442695, %v385_v48 }
 0x1c8   :  { %955 = vpow2.f32 %v388_v49 }
 0x1c9   :  { %957 = vpow2.f32 %v392_v50 }
 0x1ce   :  { %v952_v51 = vpop.eup %951 }
 0x1cf   :  { %v394_v52 = vsel %vm369_vm2, %v952_v51, 0.0  ;;  %v954_v53 = vpop.eup %953 }
 0x1d0   :  { %395 = vadd.xlane.f32.xlu0 %v394_v52  ;;  %v400_v55 = vsel %vm369_vm2, %v954_v53, 0.0 }
 0x1d2   :  { %v956_v54 = vpop.eup %955 }
 0x1d3   :  { %v397_v56 = vsel %vm369_vm2, %v956_v54, 0.0  ;;  %v958_v57 = vpop.eup %957 }
 0x1d4   :  { %401 = vadd.xlane.f32.xlu0 %v400_v55  ;;  %398 = vadd.xlane.f32.xlu1 %v397_v56  ;;  %v403_v58 = vsel %vm369_vm2, %v958_v57, 0.0 }
 0x1d8   :  { %404 = vadd.xlane.f32.xlu1 %v403_v58 }
 0x25d   :  { %v396_v61 = vpop.xlane.xlu0 %395 }
 0x25e   :  { %959 = vrcp.f32 %v396_v61 }
 0x261   :  { %v399_v62 = vpop.xlane.xlu1 %398  ;;  %v402_v63 = vpop.xlane.xlu0 %401 }
 0x262   :  { %961 = vrcp.f32 %v399_v62 }
 0x263   :  { %963 = vrcp.f32 %v402_v63 }
 0x265   :  { %v405_v0 = vpop.xlane.xlu1 %404 }
 0x266   :  { %965 = vrcp.f32 %v405_v0 }
 0x268   :  { %v960_v1 = vpop.eup %959 }
 0x269   :  { %v410_v3 = vmul.f32 %v960_v1, %v952_v51 }
 0x26c   :  { %v962_v2 = vpop.eup %961 }
 0x26d   :  { %v411_v4 = vmul.f32 %v962_v2, %v956_v54  ;;  %v964_v5 = vpop.eup %963 }
 0x26e   :  { %v412_v9 = vmul.f32 %v964_v5, %v954_v53 }
 0x26f   :  { %v414_v7 = vpack.c.bf16 %v411_v4, %v410_v3 }
 0x270   :  { %v966_v8 = vpop.eup %965 }
 0x271   :  { %v413_v10 = vmul.f32 %v966_v8, %v958_v57  ;;  %880 = vmatmul.mubr.msk.bf16.vlgmr.msra.gmra.mrb[4].mxu0 %vm369_vm2, %v414_v7 }
 0x272   :  { %890 = vmatpush3.bf16.msra.mxu0 %v943_v6  ;;  %905 = vmatprep.mubr.msk.bf16.mxu0 %vm1076_vm0, %v1075_v12 }
 0x273   :  { %v415_v13 = vpack.c.bf16 %v413_v10, %v412_v9  ;;  %891 = vmatprep.subr.bf16.mxu0 %v1075_v12 }
 0x275   :  { %886 = vmatmul.mubr.msk.bf16.vlgmr.msra.gmra.mrb[4].mxu1 %vm369_vm2, %v415_v13 }
 0x276   :  { %892 = vmatpush3.bf16.msra.mxu0 %v944_v11  ;;  %910 = vmatpush3.bf16.msra.mxu1 %v943_v6 }
 0x277   :  { %893 = vmatprep.subr.bf16.mxu0 %v1075_v12  ;;  %911 = vmatprep.subr.bf16.mxu1 %v1075_v12 }
 0x278   :  { %925 = vmatprep.mubr.msk.bf16.mxu1 %vm1076_vm0, %v1075_v12 }
 0x27a   :  { %894 = vmatpush3.bf16.msra.mxu0 %v945_v14  ;;  %912 = vmatpush3.bf16.msra.mxu1 %v944_v11 }
 0x27b   :  { %895 = vmatprep.subr.bf16.mxu0 %v1075_v12  ;;  %913 = vmatprep.subr.bf16.mxu1 %v1075_v12 }
 0x27e   :  { %896 = vmatpush3.bf16.msra.mxu0 %v946_v15  ;;  %914 = vmatpush3.bf16.msra.mxu1 %v945_v14 }
 0x27f   :  { %897 = vmatprep.subr.bf16.mxu0 %v1075_v12  ;;  %915 = vmatprep.subr.bf16.mxu1 %v1075_v12 }
 0x282   :  { %898 = vmatpush3.bf16.msra.mxu0 %v947_v16  ;;  %916 = vmatpush3.bf16.msra.mxu1 %v946_v15 }
 0x283   :  { %899 = vmatprep.subr.bf16.mxu0 %v1075_v12  ;;  %917 = vmatprep.subr.bf16.mxu1 %v1075_v12 }
 0x286   :  { %900 = vmatpush3.bf16.msra.mxu0 %v948_v17  ;;  %918 = vmatpush3.bf16.msra.mxu1 %v947_v16 }
 0x287   :  { %901 = vmatprep.subr.bf16.mxu0 %v1075_v12  ;;  %919 = vmatprep.subr.bf16.mxu1 %v1075_v12 }
 0x28a   :  { %902 = vmatpush3.bf16.msra.mxu0 %v949_v19  ;;  %920 = vmatpush3.bf16.msra.mxu1 %v948_v17 }
 0x28b   :  { %903 = vmatprep.subr.bf16.mxu0 %v1075_v12  ;;  %921 = vmatprep.subr.bf16.mxu1 %v1075_v12 }
 0x28e   :  { %922 = vmatpush3.bf16.msra.mxu1 %v949_v19  ;;  %904 = vmatpush3.bf16.msra.mxu0 %v950_v20 }
 0x28f   :  { %923 = vmatprep.subr.bf16.mxu1 %v1075_v12 }
 0x292   :  { %924 = vmatpush3.bf16.msra.mxu1 %v950_v20 }
 0x344   :  { %v459_v21 = vpop.f32.mrb[4].mxu0 }
 0x345   :  { %v881_v22 = vpop.f32.mrb[5].mxu0 }
 0x346   :  { %v462_v23 = vpop.f32.mrb[6].mxu0 }
 0x347   :  { %v532_v24 = vpack.c.bf16 %v462_v23, %v459_v21  ;;  %v882_v25 = vpop.f32.mrb[7].mxu0  ;;  %v818_v21 = vld [vmem:[#allocation9] ss:$0 sm:$0xff] }
 0x348   :  { %v509_v26 = vpop.f32.mrb[4].mxu1 }
 0x349   :  { %v887_v27 = vpop.f32.mrb[5].mxu1  ;;  %906 = vmatmul.mubr.bf16.vlgmr.msra.gmra.mrb[8].mxu0 %v532_v24 }
 0x34a   :  { %v512_v28 = vpop.f32.mrb[6].mxu1  ;;  %v819_v27 = vld [vmem:[#allocation10] ss:$0 sm:$0xff] }
 0x34b   :  { %v533_v29 = vpack.c.bf16 %v512_v28, %v509_v26  ;;  %v888_v30 = vpop.f32.mrb[7].mxu1 }
 0x34d   :  { %926 = vmatmul.mubr.bf16.vlgmr.msra.gmra.mrb[8].mxu1 %v533_v29 }
 0x41c   :  { %v616_v12 = vpop.f32.mrb[8].mxu0 }
 0x41d   :  { %v668_v34 = vadd.f32 %v664_v31, %v616_v12  ;;  %v907_v35 = vpop.f32.mrb[9].mxu0 }
 0x41e   :  { %v619_v36 = vpop.f32.mrb[10].mxu0 }
 0x41f   :  { %v669_v38 = vadd.f32 %v665_v32, %v619_v36  ;;  %v908_v39 = vpop.f32.mrb[11].mxu0  ;;  %v679_v40 = vadd.f32 %v817_v33, %v668_v34 }
 0x420   :  { %v657_v41 = vpop.f32.mrb[8].mxu1 }
 0x421   :  { %v670_v43 = vadd.f32 %v666_v37, %v657_v41  ;;  %v927_v44 = vpop.f32.mrb[9].mxu1  ;;  %683 = vadd.xlane.f32.xlu0 %v679_v40  ;;  %v680_v45 = vadd.f32 %v817_v33, %v669_v38 }
 0x422   :  { %v660_v46 = vpop.f32.mrb[10].mxu1 }
 0x423   :  { %v671_v47 = vadd.f32 %v667_v42, %v660_v46  ;;  %v928_v48 = vpop.f32.mrb[11].mxu1  ;;  %685 = vadd.xlane.f32.xlu1 %v680_v45  ;;  %v681_v49 = vadd.f32 %v817_v33, %v670_v43 }
 0x425   :  { %687 = vadd.xlane.f32.xlu0 %v681_v49  ;;  %v682_v50 = vadd.f32 %v817_v33, %v671_v47 }
 0x427   :  { %689 = vadd.xlane.f32.xlu1 %v682_v50 }
 0x4ae   :  { %v684_v51 = vpop.xlane.xlu0 %683 }
 0x4af   :  { %v691_v52 = vmul.f32 0.03125, %v684_v51 }
 0x4b0   :  { %v686_v53 = vpop.xlane.xlu1 %685 }
 0x4b1   :  { %v695_v54 = vsub.f32 %v679_v40, %v691_v52  ;;  %v692_v55 = vmul.f32 0.03125, %v686_v53 }
 0x4b2   :  { %v688_v56 = vpop.xlane.xlu0 %687 }
 0x4b3   :  { %v696_v57 = vsub.f32 %v680_v45, %v692_v55  ;;  %v693_v58 = vmul.f32 0.03125, %v688_v56  ;;  %v700_v59 = vsel %vm699_vm3, %v695_v54, 0.0 }
 0x4b4   :  { %v690_v60 = vpop.xlane.xlu1 %689  ;;  %v704_v61 = vmul.f32 %v700_v59, %v700_v59 }
 0x4b5   :  { %v697_v62 = vsub.f32 %v681_v49, %v693_v58  ;;  %v694_v63 = vmul.f32 0.03125, %v690_v60  ;;  %v701_v0 = vsel %vm699_vm3, %v696_v57, 0.0 }
 0x4b6   :  { %708 = vadd.xlane.f32.xlu0 %v704_v61  ;;  %v705_v1 = vmul.f32 %v701_v0, %v701_v0 }
 0x4b7   :  { %v698_v2 = vsub.f32 %v682_v50, %v694_v63  ;;  %v702_v3 = vsel %vm699_vm3, %v697_v62, 0.0 }
 0x4b8   :  { %710 = vadd.xlane.f32.xlu1 %v705_v1  ;;  %v706_v4 = vmul.f32 %v702_v3, %v702_v3 }
 0x4b9   :  { %v703_v5 = vsel %vm699_vm3, %v698_v2, 0.0 }
 0x4ba   :  { %712 = vadd.xlane.f32.xlu0 %v706_v4  ;;  %v707_v6 = vmul.f32 %v703_v5, %v703_v5 }
 0x4bc   :  { %714 = vadd.xlane.f32.xlu1 %v707_v6 }
 0x543   :  { %v709_v7 = vpop.xlane.xlu0 %708 }
 0x544   :  { %v716_v8 = vmul.f32 0.03125, %v709_v7 }
 0x545   :  { %v711_v9 = vpop.xlane.xlu1 %710 }
 0x546   :  { %v720_v10 = vadd.f32 1e-05, %v716_v8  ;;  %v717_v11 = vmul.f32 0.03125, %v711_v9 }
 0x547   :  { %v713_v13 = vpop.xlane.xlu0 %712 }
 0x548   :  { %967 = vrsqrt.f32 %v720_v10  ;;  %v721_v14 = vadd.f32 1e-05, %v717_v11  ;;  %v718_v15 = vmul.f32 0.03125, %v713_v13 }
 0x549   :  { %v715_v16 = vpop.xlane.xlu1 %714 }
 0x54a   :  { %969 = vrsqrt.f32 %v721_v14  ;;  %v722_v17 = vadd.f32 1e-05, %v718_v15  ;;  %v719_v19 = vmul.f32 0.03125, %v715_v16 }
 0x54c   :  { %971 = vrsqrt.f32 %v722_v17  ;;  %v723_v20 = vadd.f32 1e-05, %v719_v19 }
 0x54e   :  { %973 = vrsqrt.f32 %v723_v20 }
 0x552   :  { %v968_v18 = vpop.eup %967 }
 0x553   :  { %v728_v22 = vmul.f32 %v968_v18, %v700_v59 }
 0x554   :  { %v970_v23 = vpop.eup %969 }
 0x555   :  { %v739_v24 = vmul.f32 %v818_v21, %v728_v22  ;;  %v729_v25 = vmul.f32 %v970_v23, %v701_v0 }
 0x556   :  { %v972_v26 = vpop.eup %971 }
 0x557   :  { %v740_v28 = vmul.f32 %v818_v21, %v729_v25  ;;  %v730_v29 = vmul.f32 %v972_v26, %v702_v3  ;;  %v750_v31 = vadd.f32 %v819_v27, %v739_v24 }
 0x558   :  { %v974_v30 = vpop.eup %973 }
 0x559   :  { %v751_v12 = vadd.f32 %v819_v27, %v740_v28  ;;  %v741_v32 = vmul.f32 %v818_v21, %v730_v29  ;;  %v731_v33 = vmul.f32 %v974_v30, %v703_v5 }
 0x55b   :  { %v831_v34 = vpack.c.bf16 %v751_v12, %v750_v31  ;;  %v742_v35 = vmul.f32 %v818_v21, %v731_v33  ;;  %v752_v36 = vadd.f32 %v819_v27, %v741_v32 }
 0x55d   :  { %832 = vst [vmem:[%s1301_s8] sm:$0xff] %v831_v34   ;;  %v753_v37 = vadd.f32 %v819_v27, %v742_v35 }
 0x55f   :  { %v836_v38 = vpack.c.bf16 %v753_v37, %v752_v36 }
 0x561   :  { %838 = vst [vmem:[%s1301_s8 + $0x8] sm:$0xff] %v836_v38  }
 0x562   :  { %778 = vsyncpa [#allocation6], 1 }
 0x563   :  { %779 = vsyncpa [#allocation8], 1 }
 0x564   :  { %780 = vsyncpa [#allocation11], 1 }

// kernel: seq_context.5
= control target key start
LH: loop header
LB: loop body
LE: loop exit
PB: predicated region body
PF: predicated region fallthrough
CT: control target
= control target key end

     0   :  { %8 = vsyncpa [#allocation4], 0  ;;  %s707_s0 = inlined_call_operand.vmem [shape: bf16[32,128], index: 0, kind: input, shape index: {}]   ;;  %s708_s1 = inlined_call_operand.hbm [shape: bf16[128,384], index: 1, kind: input, shape index: {}]   ;;  %s709_s2 = inlined_call_operand.hbm [shape: f32[1,384], index: 2, kind: input, shape index: {}]   ;;  %s710_s3 = inlined_call_operand.vmem [shape: bf16[32,384], index: 3, kind: output, shape index: {}]  }
   0x1   :  { %9 = vsyncpa [#allocation6], 0  ;;  %s628_s12 = smov [#allocation3]   ;;  %s580_s16 = scalar_lea.hbm %s708_s1, 3072 }
   0x2   :  { %s17_s13 = sshll.u32 %s628_s12, 4  ;;  %p581_p0 = scmp.ne.s32.totalorder %s708_s1, %s580_s16  ;;  %s18_s13 = int_to_ptr.vmem [resolvable:$true] %s17_s13 }
   0x3   :  { %p584_p1 = scmp.lt.u32.totalorder %s580_s16, %s708_s1 }
   0x5   :  { %p586_p2 = pnand %p584_p1, %p581_p0 }
   0x7   :  { %589 = shalt.err (!%p586_p2)
}
   0x8   :  { %s590_s21 = scalar_lea.vmem %s18_s13, 3072  ;;  %p595_p4 = scmp.lt.s32.totalorder %s18_s13, %s18_s13 }
   0x9   :  { %p591_p3 = scmp.ne.s32.totalorder %s18_s13, %s590_s21  ;;  %p596_p5 = scmp.lt.s32.totalorder %s590_s21, %s590_s21 }
   0xb   :  { %p597_p6 = por %p596_p5, %p595_p4 }
   0xd   :  { %p598_p7 = pnand %p597_p6, %p591_p3 }
   0xf   :  { %601 = shalt.err (!%p598_p7)
}
  0x10   :  { %s629_s22 = smov 192   ;;  %s630_s23 = smov 12  }
  0x11   :  { %23 = dma.hbm_to_vmem [thread:$0]  %s708_s1, 3072, %s18_s13, [#allocation4], %s629_s22, %s629_s22, %s630_s23  }
  0x12   :  { %s631_s26 = smov [#allocation5]   ;;  %s602_s30 = scalar_lea.hbm %s709_s2, 48 }
  0x13   :  { %s30_s27 = sshll.u32 %s631_s26, 4  ;;  %p603_p8 = scmp.ne.s32.totalorder %s709_s2, %s602_s30  ;;  %s31_s27 = int_to_ptr.vmem [resolvable:$true] %s30_s27 }
  0x14   :  { %p606_p9 = scmp.lt.u32.totalorder %s602_s30, %s709_s2 }
  0x16   :  { %p608_p10 = pnand %p606_p9, %p603_p8 }
  0x18   :  { %611 = shalt.err (!%p608_p10)
}
  0x19   :  { %s612_s8 = scalar_lea.vmem %s31_s27, 48  ;;  %s616_s1 = scalar_lea.vmem %s31_s27, 64 }
  0x1a   :  { %p613_p11 = scmp.ne.s32.totalorder %s31_s27, %s612_s8  ;;  %p617_p12 = scmp.lt.s32.totalorder %s31_s27, %s31_s27 }
  0x1b   :  { %p618_p13 = scmp.lt.s32.totalorder %s616_s1, %s612_s8 }
  0x1d   :  { %p619_p0 = por %p618_p13, %p617_p12 }
  0x1f   :  { %p620_p1 = pnand %p619_p0, %p613_p11 }
  0x21   :  { %623 = shalt.err (!%p620_p1)
}
  0x22   :  { %33 = dma.hbm_to_vmem [thread:$0]  %s709_s2, 48, %s31_s27, [#allocation6]  }
  0x23   :  { %624 = dma.done.wait [#allocation4], 3072  }
  0x24   :  { %625 = vsyncadd [#allocation4], 4294964224 }
  0x25   :  { %626 = dma.done.wait [#allocation6], 48  }
  0x26   :  { %627 = vsyncadd [#allocation6], 4294967248  ;;  %v632_v0 = vmov 0   ;;  %v546_v1 = vld [vmem:[#allocation3 + $0x4] ss:$12 sps:$4 sm:$0xff]   ;;  %v579_v26 = vld [vmem:[%s707_s0 + $0x8] sm:$0xff]   ;;  %v388_v27 = vlaneseq }
  0x27   :  { %277 = vmatprep.mubr.bf16.mxu0 %v632_v0  ;;  %v548_v2 = vld [vmem:[#allocation3] ss:$12 sps:$4 sm:$0xff]   ;;  %245 = vmatprep.subr.bf16.mxu0 %v546_v1  ;;  %v549_v3 = vld [vmem:[#allocation3 + $0x1c] ss:$12 sps:$4 sm:$0xff]   ;;  %v551_v4 = vld [vmem:[#allocation3 + $0x18] ss:$12 sps:$4 sm:$0xff]  }
  0x28   :  { %246 = vmatpush1.bf16.msra.mxu0 %v548_v2  ;;  %v552_v5 = vld [vmem:[#allocation3 + $0x8] ss:$12 sps:$4 sm:$0xff]   ;;  %v556_v7 = vld [vmem:[#allocation3 + $0x20] ss:$12 sps:$4 sm:$0xff]   ;;  %v555_v8 = vld [vmem:[#allocation3 + $0x30] ss:$12 sps:$4 sm:$0xff]  }
  0x29   :  { %247 = vmatprep.subr.bf16.mxu0 %v549_v3  ;;  %v553_v6 = vld [vmem:[#allocation3 + $0x34] ss:$12 sps:$4 sm:$0xff]   ;;  %521 = vmatprep.subr.bf16.mxu1 %v552_v5  ;;  %v557_v9 = vld [vmem:[#allocation3 + $0x4c] ss:$12 sps:$4 sm:$0xff]   ;;  %v564_v12 = vld [vmem:[#allocation3 + $0x50] ss:$12 sps:$4 sm:$0xff]  }
  0x2a   :  { %522 = vmatpush3.bf16.msra.mxu1 %v552_v5  ;;  %v560_v10 = vld [vmem:[#allocation3 + $0x38] ss:$12 sps:$4 sm:$0xff]   ;;  %v559_v11 = vld [vmem:[#allocation3 + $0x48] ss:$12 sps:$4 sm:$0xff]   ;;  %v563_v14 = vld [vmem:[#allocation3 + $0x60] ss:$12 sps:$4 sm:$0xff]  }
  0x2b   :  { %523 = vmatprep.subr.bf16.mxu1 %v556_v7  ;;  %v561_v13 = vld [vmem:[#allocation3 + $0x64] ss:$12 sps:$4 sm:$0xff]   ;;  %v568_v15 = vld [vmem:[#allocation3 + $0x68] ss:$12 sps:$4 sm:$0xff]   ;;  %v572_v19 = vld [vmem:[#allocation3 + $0x80] ss:$12 sps:$4 sm:$0xff]  }
  0x2c   :  { %248 = vmatpush1.bf16.msra.mxu0 %v551_v4  ;;  %v565_v16 = vld [vmem:[#allocation3 + $0x7c] ss:$12 sps:$4 sm:$0xff]   ;;  %v567_v17 = vld [vmem:[#allocation3 + $0x78] ss:$12 sps:$4 sm:$0xff]   ;;  %v569_v20 = vld [vmem:[#allocation3 + $0x94] ss:$12 sps:$4 sm:$0xff]  }
  0x2d   :  { %249 = vmatprep.subr.bf16.mxu0 %v553_v6  ;;  %v577_v18 = vld [vmem:[%s707_s0] sm:$0xff]   ;;  %v571_v21 = vld [vmem:[#allocation3 + $0x90] ss:$12 sps:$4 sm:$0xff]   ;;  %v573_v23 = vld [vmem:[#allocation3 + $0xac] ss:$12 sps:$4 sm:$0xff]   ;;  %v389_v28 = vshrl.u32 %v388_v27, 7 }
  0x2e   :  { %524 = vmatpush3.bf16.msra.mxu1 %v556_v7  ;;  %537 = vmatprep.mubr.bf16.mxu1 %v577_v18  ;;  %v576_v22 = vld [vmem:[#allocation3 + $0x98] ss:$12 sps:$4 sm:$0xff]   ;;  %v575_v24 = vld [vmem:[#allocation3 + $0xa8] ss:$12 sps:$4 sm:$0xff]   ;;  %v578_v25 = vld [vmem:[#allocation3 + $0xb0] ss:$12 sps:$4 sm:$0xff]  }
  0x2f   :  { %525 = vmatprep.subr.bf16.mxu1 %v560_v10  ;;  %v390_v29 = vsub.s32 0, %v389_v28  ;;  %v386_v30 = vld [vmem:[#allocation5] sm:$0x7]  ;;  %v394_v31 = vsub.s32 1, %v389_v28  ;;  %v398_v32 = vsub.s32 2, %v389_v28 }
  0x30   :  { %250 = vmatpush1.bf16.msra.mxu0 %v555_v8 }
  0x31   :  { %251 = vmatprep.subr.bf16.mxu0 %v557_v9  ;;  %v391_v33 = vrot.slane %v386_v30, %v390_v29  ;;  %v395_v34 = vrot.slane %v386_v30, %v394_v31  ;;  %v399_v36 = vrot.slane %v386_v30, %v398_v32 }
  0x32   :  { %526 = vmatpush3.bf16.msra.mxu1 %v560_v10 }
  0x33   :  { %527 = vmatprep.subr.bf16.mxu1 %v564_v12 }
  0x34   :  { %252 = vmatpush1.bf16.msra.mxu0 %v559_v11 }
  0x35   :  { %253 = vmatprep.subr.bf16.mxu0 %v561_v13 }
  0x36   :  { %528 = vmatpush3.bf16.msra.mxu1 %v564_v12 }
  0x37   :  { %529 = vmatprep.subr.bf16.mxu1 %v568_v15 }
  0x38   :  { %254 = vmatpush1.bf16.msra.mxu0 %v563_v14 }
  0x39   :  { %255 = vmatprep.subr.bf16.mxu0 %v565_v16 }
  0x3a   :  { %530 = vmatpush3.bf16.msra.mxu1 %v568_v15 }
  0x3b   :  { %531 = vmatprep.subr.bf16.mxu1 %v572_v19 }
  0x3c   :  { %256 = vmatpush1.bf16.msra.mxu0 %v567_v17 }
  0x3d   :  { %257 = vmatprep.subr.bf16.mxu0 %v569_v20 }
  0x3e   :  { %532 = vmatpush3.bf16.msra.mxu1 %v572_v19 }
  0x3f   :  { %533 = vmatprep.subr.bf16.mxu1 %v576_v22 }
  0x40   :  { %258 = vmatpush1.bf16.msra.mxu0 %v571_v21 }
  0x41   :  { %259 = vmatprep.subr.bf16.mxu0 %v573_v23 }
  0x42   :  { %534 = vmatpush3.bf16.msra.mxu1 %v576_v22 }
  0x43   :  { %535 = vmatprep.subr.bf16.mxu1 %v578_v25 }
  0x44   :  { %260 = vmatpush1.bf16.msra.mxu0 %v575_v24 }
  0x46   :  { %536 = vmatpush3.bf16.msra.mxu1 %v578_v25 }
  0x47   :  { %278 = vmatmul.mubr.bf16.vlgmr.msra.gmra.mrb[0].mxu0 %v577_v18 }
  0x48   :  { %287 = vmatprep.mubr.bf16.mxu0 %v632_v0 }
  0x49   :  { %538 = vmatmul.mubr.bf16.vlgmr.msra.gmra.mrb[0].mxu1 %v579_v26 }
  0x4f   :  { %288 = vmatmul.mubr.bf16.gmra.mrb[4].mxu0 %v579_v26 }
 0x11a   :  { %v279_v35 = vpop.f32.mrb[0].mxu0 }
 0x11b   :  { %v403_v37 = vadd.f32 %v391_v33, %v279_v35  ;;  %v281_v38 = vpop.f32.mrb[1].mxu0 }
 0x11c   :  { %v404_v39 = vadd.f32 %v395_v34, %v281_v38  ;;  %v283_v40 = vpop.f32.mrb[2].mxu0  ;;  %v539_v43 = vpop.f32.mrb[0].mxu1 }
 0x11d   :  { %v406_v41 = vadd.f32 %v391_v33, %v283_v40  ;;  %v285_v42 = vpop.f32.mrb[3].mxu0  ;;  %v411_v46 = vadd.f32 %v539_v43, %v399_v36  ;;  %v332_v47 = vpop.f32.mrb[1].mxu1 }
 0x11e   :  { %v503_v44 = vpack.c.bf16 %v404_v39, %v403_v37  ;;  %v407_v45 = vadd.f32 %v395_v34, %v285_v42  ;;  %v405_v48 = vadd.f32 %v399_v36, %v332_v47  ;;  %v540_v49 = vpop.f32.mrb[2].mxu1 }
 0x11f   :  { %v508_v51 = vpack.c.bf16 %v411_v46, %v411_v46  ;;  %v414_v52 = vadd.f32 %v540_v49, %v399_v36  ;;  %v335_v53 = vpop.f32.mrb[3].mxu1 }
 0x120   :  { %455 = vst [vmem:[%s710_s3] sm:$0xff] %v503_v44  ;;  %v505_v50 = vpack.c.bf16 %v407_v45, %v406_v41  ;;  %v504_v54 = vpack.c.bf16 %v405_v48, %v405_v48  ;;  %v408_v55 = vadd.f32 %v399_v36, %v335_v53 }
 0x121   :  { %460 = vst [vmem:[%s710_s3 + $0x20] sm:$0xf] %v508_v51  ;;  %v510_v56 = vpack.c.bf16 %v414_v52, %v414_v52 }
 0x122   :  { %457 = vst [vmem:[%s710_s3 + $0xc] sm:$0xff] %v505_v50  ;;  %v289_v57 = vpop.f32.mrb[4].mxu0  ;;  %456 = vst [vmem:[%s710_s3 + $0x8] sm:$0xf] %v504_v54  ;;  %v506_v59 = vpack.c.bf16 %v408_v55, %v408_v55 }
 0x123   :  { %v409_v58 = vadd.f32 %v391_v33, %v289_v57  ;;  %v291_v60 = vpop.f32.mrb[5].mxu0  ;;  %462 = vst [vmem:[%s710_s3 + $0x2c] sm:$0xf] %v510_v56 }
 0x124   :  { %v410_v61 = vadd.f32 %v395_v34, %v291_v60  ;;  %v293_v62 = vpop.f32.mrb[6].mxu0  ;;  %458 = vst [vmem:[%s710_s3 + $0x14] sm:$0xf] %v506_v59 }
 0x125   :  { %v412_v63 = vadd.f32 %v391_v33, %v293_v62  ;;  %v295_v0 = vpop.f32.mrb[7].mxu0 }
 0x126   :  { %v507_v1 = vpack.c.bf16 %v410_v61, %v409_v58  ;;  %v413_v2 = vadd.f32 %v395_v34, %v295_v0 }
 0x128   :  { %459 = vst [vmem:[%s710_s3 + $0x18] sm:$0xff] %v507_v1  ;;  %v509_v3 = vpack.c.bf16 %v413_v2, %v412_v63 }
 0x12a   :  { %461 = vst [vmem:[%s710_s3 + $0x24] sm:$0xff] %v509_v3 }
 0x12b   :  { %467 = vsyncpa [#allocation4], 1 }
 0x12c   :  { %468 = vsyncpa [#allocation6], 1 }

// kernel: seq_context.7
= control target key start
LH: loop header
LB: loop body
LE: loop exit
PB: predicated region body
PF: predicated region fallthrough
CT: control target
= control target key end

     0   :  { %8 = vsyncpa [#allocation4], 0  ;;  %s1535_s0 = inlined_call_operand.vmem [shape: bf16[32,128], index: 0, kind: input, shape index: {}]   ;;  %s1536_s1 = inlined_call_operand.hbm [shape: bf16[128,2048], index: 1, kind: input, shape index: {}]   ;;  %s1537_s2 = inlined_call_operand.hbm [shape: f32[1,2048], index: 2, kind: input, shape index: {}]   ;;  %s1538_s3 = inlined_call_operand.vmem [shape: bf16[32,2048], index: 3, kind: output, shape index: {}]  }
   0x1   :  { %10 = vsyncpa [#allocation4 + $0x1], 0 }
   0x2   :  { %11 = vsyncpa [#allocation6], 0 }
   0x3   :  { %13 = vsyncpa [#allocation6 + $0x1], 0  ;;  %s1292_s12 = smov 0   ;;  %s1294_s13 = smov 0  }
   0x4   :  { %s1296_s14 = smov 0   ;;  %s1298_s15 = smov 0  }
   0x5   :  { %s1300_s16 = smov 0   ;;  %s1302_s17 = smov 0  }
   0x6 LB: > { %s963_s18 = sadd.s32 4294967295, %s1264_s17   ;;  %s34_s19 = sadd.s32 1, %s1260_s16  ;;  %s1264_s17 = sphi %s1302_s17, %s19_s17   ;;  %s1260_s16 = sphi %s1300_s16, %s1553_s16   ;;  %s1256_s15 = sphi %s1298_s15, %s1552_s15   ;;  %s1252_s14 = sphi %s1296_s14, %s1551_s14   ;;  %s1248_s13 = sphi %s1294_s13, %s1550_s13   ;;  %s1244_s12 = sphi %s1292_s12, %s1549_s12  }
   0x7   : > { %p36_p0 = scmp.ge.s32.totalorder %s34_s19, 4  ;;  %s75_s20 = sadd.s32 1, %s1252_s14 }
   0x8   : > { %p82_p1 = scmp.ne.s32.totalorder %s1252_s14, %s1248_s13  ;;  %p83_p2 = scmp.eq.s32.totalorder %s1264_s17, 0 }
   0x9   : > { %s1555_s19 = smov (%p36_p0, %s34_s19), 0  ;;  %p88_p4 = scmp.ne.s32.totalorder %s1248_s13, %s1244_s12 }
   0xa   : > { %p1328_p3 = por %p83_p2, %p82_p1  ;;  %s71_s22 = ssub.s32 %s1260_s16, %s1555_s19 }
   0xb   : > { %p89_p5 = scmp.eq.s32.totalorder %s963_s18, 0  ;;  %p73_p6 = scmp.eq.s32.totalorder %s71_s22, 0 }
   0xc   : > { %p140_p7 = scmp.eq.s32.totalorder %s963_s18, 3  ;;  %p1047_p10 = scmp.lt.s32.totalorder %s1264_s17, 4 }
   0xd   : > { %p1335_p8 = por %p89_p5, %p88_p4  ;;  %s1348_s26 = sand.u32 1, %s1252_s14  }
   0xe   : > { %s1340_s24 = scalar_select %p73_p6, %s1252_s14, %s75_s20  }
   0xf   : > { %s1541_s23 = scalar_select %p1335_p8, 1, 0 }
  0x10   : > { %p1342_p9 = por %p140_p7, %p82_p1  ;;  %s1025_s27 = sshll.u32 %s1260_s16, 8 }
  0x11   : > { %s968_s28 = sshll.u32 %s1348_s26, 8  ;;  %s1355_s4 = scalar_lea.hbm %s1536_s1, %s1025_s27 }
  0x12   : > { %s1542_s25 = scalar_select %p1342_p9, 1, 0 }
  0x13   : > { %s182_s5 = scalar_lea.vmem [#allocation3], %s968_s28  ;;  %p1359_p11 = pnand %p1047_p10, %p1328_p3 }
  0x14   : > { %s192_s6 = sshll.u32 %s182_s5, 4  ;;  %s179_s8 = scalar_lea.sflag [#allocation4], %s1348_s26  ;;  %s1363_s6 = int_to_ptr.vmem [resolvable:$true] %s192_s6 }
  0x15   : > { %s1150_s9 = scalar_lea.hbm %s1355_s4, 4096  ;;  %p1152_p0 = pneg %p1359_p11 }
  0x16   : > { %p1151_p13 = scmp.ne.s32.totalorder %s1355_s4, %s1150_s9  ;;  %s1155_s12 = scalar_lea.hbm %s1536_s1, 16384 }
  0x17   : > { %p1156_p3 = scmp.lt.u32.totalorder %s1355_s4, %s1536_s1  ;;  %p1157_p4 = scmp.lt.u32.totalorder %s1155_s12, %s1150_s9 }
  0x18   : > { %p1153_p1 = pnand %p1152_p0, %p1151_p13  ;;  %p1159_p6 = scmp.lt.u32.totalorder %s1150_s9, %s1355_s4 }
  0x19   : > { %p1158_p5 = por %p1157_p4, %p1156_p3 }
  0x1a   : > { %p1154_p2 = pneg %p1153_p1 }
  0x1b   : > { %p1160_p7 = por %p1159_p6, %p1158_p5 }
  0x1d   : > { %p1161_p10 = pnand %p1160_p7, %p1154_p2 }
  0x1f   : > { %1164 = shalt.err (!%p1161_p10)
}
  0x20   : > { %s1165_s21 = scalar_lea.vmem %s1363_s6, 4096  ;;  %s1266_s22 = smov [#allocation3]  }
  0x21   : > { %p1166_p13 = scmp.ne.s32.totalorder %s1363_s6, %s1165_s21  ;;  %s1170_s27 = sshll.u32 %s1266_s22, 4  ;;  %s1171_s27 = int_to_ptr.vmem [resolvable:$false] %s1170_s27 }
  0x22   : > { %s1172_s28 = scalar_lea.vmem %s1171_s27, 8192  ;;  %p1173_p9 = scmp.lt.s32.totalorder %s1363_s6, %s1171_s27 }
  0x23   : > { %p1168_p1 = pnand %p1166_p13, %p1152_p0  ;;  %p1174_p3 = scmp.lt.s32.totalorder %s1172_s28, %s1165_s21 }
  0x25   : > { %p1169_p12 = pneg %p1168_p1  ;;  %p1175_p4 = por %p1174_p3, %p1173_p9 }
  0x27   : > { %p1176_p5 = pnand %p1175_p4, %p1169_p12 }
  0x29   : > { %1179 = shalt.err (!%p1176_p5)
}
  0x2a   : > { %s1267_s29 = smov 1024   ;;  %s1268_s30 = smov 256  }
  0x2b   : > { %s1269_s5 = smov 16   ;;  %p219_p2 = scmp.lt.s32.totalorder %s1264_s17, 5 }
  0x2c   : > { %1043 = dma.hbm_to_vmem [thread:$0]  (!%p1359_p11), %s1355_s4, 4096, %s1363_s6, %s179_s8, %s1267_s29, %s1268_s30, %s1269_s5  }
  0x2d   : > { %s971_s9 = sshll.u32 %s1348_s26, 2  ;;  %s1026_s10 = sshll.u32 %s1260_s16, 6 }
  0x2e   : > { %p1544_p9 = scmp.ge.s32.totalorder %s1264_s17, 1  ;;  %s1406_s20 = scalar_lea.hbm %s1537_s2, %s1026_s10 }
  0x2f   : > { %s206_s21 = scalar_lea.vmem [#allocation5], %s971_s9  ;;  %s203_s4 = scalar_lea.sflag [#allocation6], %s1348_s26 }
  0x30   : > { %p1399_p12 = pnand %p1544_p9, %p219_p2  ;;  %s214_s22 = sshll.u32 %s206_s21, 4  ;;  %s215_s22 = int_to_ptr.vmem [resolvable:$true] %s214_s22 }
  0x31   : > { %s1180_s6 = scalar_lea.hbm %s1406_s20, 64  ;;  %s1185_s28 = scalar_lea.hbm %s1537_s2, 256 }
  0x32   : > { %s1545_s11 = scalar_select %p1399_p12, 1, 0 }
  0x33   : > { %p1181_p6 = scmp.ne.s32.totalorder %s1406_s20, %s1180_s6  ;;  %p1186_p13 = scmp.lt.u32.totalorder %s1406_s20, %s1537_s2 }
  0x34   : > { %p1187_p1 = scmp.lt.u32.totalorder %s1185_s28, %s1180_s6  ;;  %p1189_p4 = scmp.lt.u32.totalorder %s1180_s6, %s1406_s20 }
  0x35   : > { %p1183_p7 = pnand %p1181_p6, %p1152_p0 }
  0x36   : > { %p1188_p3 = por %p1187_p1, %p1186_p13 }
  0x37   : > { %p1184_p10 = pneg %p1183_p7 }
  0x38   : > { %p1190_p5 = por %p1189_p4, %p1188_p3 }
  0x3a   : > { %p1191_p2 = pnand %p1190_p5, %p1184_p10 }
  0x3c   : > { %1194 = shalt.err (!%p1191_p2)
}
  0x3d   : > { %s1195_s26 = scalar_lea.vmem %s215_s22, 64  ;;  %s1270_s5 = smov [#allocation5]  }
  0x3e   : > { %p1196_p9 = scmp.ne.s32.totalorder %s215_s22, %s1195_s26  ;;  %s1200_s9 = sshll.u32 %s1270_s5, 4  ;;  %s1201_s9 = int_to_ptr.vmem [resolvable:$false] %s1200_s9 }
  0x3f   : > { %s1202_s10 = scalar_lea.vmem %s1201_s9, 128  ;;  %p1203_p8 = scmp.lt.s32.totalorder %s215_s22, %s1201_s9 }
  0x40   : > { %p1198_p6 = pnand %p1196_p9, %p1152_p0  ;;  %p1204_p12 = scmp.lt.s32.totalorder %s1202_s10, %s1195_s26 }
  0x42   : > { %p1199_p7 = pneg %p1198_p6  ;;  %p1205_p1 = por %p1204_p12, %p1203_p8 }
  0x44   : > { %p1206_p13 = pnand %p1205_p1, %p1199_p7 }
  0x46   : > { %1209 = shalt.err (!%p1206_p13)
}
  0x47   : > { %1046 = dma.hbm_to_vmem [thread:$0]  (!%p1359_p11), %s1406_s20, 64, %s215_s22, %s203_s4  }
  0x48   : > { %p1546_p10 = scmp.ne.s32.totalorder %s1545_s11, 0 }
  0x49   : > { %s1431_s12 = sand.u32 (!%p1546_p10), 1, %s1248_s13   ;;  %p1547_p8 = scmp.ne.s32.totalorder (!%p1546_p10), %s1541_s23, 0 }
  0x4a   : > { %223 = sbr.rel (%p1546_p10) target bundleno = 357 (0x165), region = 32  ;;  %s975_s18 = sshll.u32 (!%p1546_p10), %s1431_s12, 8 }
  0x4b   : > { %s226_s21 = scalar_lea.sflag (!%p1546_p10), [#allocation4], %s1431_s12  ;;  %s1435_s6 = scalar_lea.vmem (!%p1546_p10), [#allocation3], %s975_s18 }
  0x51   : > { %1235 = dma.done.wait (%p1547_p8), %s226_s21, 4096  }
  0x52   : > { %1237 = vsyncadd (%p1547_p8), %s226_s21, 4294963200  ;;  %s976_s7 = sshll.u32 %s1431_s12, 2  ;;  %s235_s11 = scalar_lea.sflag [#allocation6], %s1431_s12 }
  0x53   : > { %s1443_s20 = scalar_lea.vmem [#allocation5], %s976_s7 }
  0x54   : > { %1239 = dma.done.wait (%p1547_p8), %s235_s11, 64  }
  0x55   : > { %1241 = vsyncadd (%p1547_p8), %s235_s11, 4294967232  ;;  %v1271_v0 = vmov 0   ;;  %v1100_v1 = vld [vmem:[%s1435_s6 + $0x4] ss:$16 sps:$4 sm:$0xff]   ;;  %v1102_v2 = vld [vmem:[%s1435_s6 + $0xc] ss:$16 sps:$4 sm:$0xff]   ;;  %v691_v35 = vlaneseq }
  0x56   : > { %564 = vmatprep.mubr.bf16.mxu0 %v1271_v0  ;;  %617 = vmatprep.mubr.bf16.mxu1 %v1271_v0  ;;  %v1104_v3 = vld [vmem:[%s1435_s6] ss:$16 sps:$4 sm:$0xff]   ;;  %v1105_v4 = vld [vmem:[%s1435_s6 + $0x8] ss:$16 sps:$4 sm:$0xff]   ;;  %v1106_v5 = vld [vmem:[%s1435_s6 + $0x24] ss:$16 sps:$4 sm:$0xff]  }
  0x57   : > { %532 = vmatprep.subr.bf16.mxu0 %v1100_v1  ;;  %585 = vmatprep.subr.bf16.mxu1 %v1102_v2  ;;  %v1108_v6 = vld [vmem:[%s1435_s6 + $0x2c] ss:$16 sps:$4 sm:$0xff]   ;;  %v1110_v7 = vld [vmem:[%s1435_s6 + $0x20] ss:$16 sps:$4 sm:$0xff]   ;;  %v1111_v8 = vld [vmem:[%s1435_s6 + $0x28] ss:$16 sps:$4 sm:$0xff]  }
  0x58   : > { %533 = vmatpush1.bf16.msra.mxu0 %v1104_v3  ;;  %586 = vmatpush1.bf16.msra.mxu1 %v1105_v4  ;;  %v1112_v9 = vld [vmem:[%s1435_s6 + $0x44] ss:$16 sps:$4 sm:$0xff]   ;;  %v1114_v10 = vld [vmem:[%s1435_s6 + $0x4c] ss:$16 sps:$4 sm:$0xff]   ;;  %v1116_v11 = vld [vmem:[%s1435_s6 + $0x40] ss:$16 sps:$4 sm:$0xff]  }
  0x59   : > { %534 = vmatprep.subr.bf16.mxu0 %v1106_v5  ;;  %587 = vmatprep.subr.bf16.mxu1 %v1108_v6  ;;  %v1117_v12 = vld [vmem:[%s1435_s6 + $0x48] ss:$16 sps:$4 sm:$0xff]   ;;  %v1118_v13 = vld [vmem:[%s1435_s6 + $0x64] ss:$16 sps:$4 sm:$0xff]   ;;  %v1120_v14 = vld [vmem:[%s1435_s6 + $0x6c] ss:$16 sps:$4 sm:$0xff]  }
  0x5a   : > { %v1122_v15 = vld [vmem:[%s1435_s6 + $0x60] ss:$16 sps:$4 sm:$0xff]   ;;  %v1123_v16 = vld [vmem:[%s1435_s6 + $0x68] ss:$16 sps:$4 sm:$0xff]   ;;  %v1124_v17 = vld [vmem:[%s1435_s6 + $0x84] ss:$16 sps:$4 sm:$0xff]  }
  0x5b   : > { %v1126_v18 = vld [vmem:[%s1435_s6 + $0x8c] ss:$16 sps:$4 sm:$0xff]   ;;  %v1128_v19 = vld [vmem:[%s1435_s6 + $0x80] ss:$16 sps:$4 sm:$0xff]   ;;  %v1129_v20 = vld [vmem:[%s1435_s6 + $0x88] ss:$16 sps:$4 sm:$0xff]  }
  0x5c   : > { %535 = vmatpush1.bf16.msra.mxu0 %v1110_v7  ;;  %588 = vmatpush1.bf16.msra.mxu1 %v1111_v8  ;;  %v1130_v21 = vld [vmem:[%s1435_s6 + $0xa4] ss:$16 sps:$4 sm:$0xff]   ;;  %v1132_v22 = vld [vmem:[%s1435_s6 + $0xac] ss:$16 sps:$4 sm:$0xff]   ;;  %v1134_v23 = vld [vmem:[%s1435_s6 + $0xa0] ss:$16 sps:$4 sm:$0xff]  }
  0x5d   : > { %536 = vmatprep.subr.bf16.mxu0 %v1112_v9  ;;  %589 = vmatprep.subr.bf16.mxu1 %v1114_v10  ;;  %v1135_v24 = vld [vmem:[%s1435_s6 + $0xa8] ss:$16 sps:$4 sm:$0xff]   ;;  %v1136_v25 = vld [vmem:[%s1435_s6 + $0xc4] ss:$16 sps:$4 sm:$0xff]   ;;  %v1138_v26 = vld [vmem:[%s1435_s6 + $0xcc] ss:$16 sps:$4 sm:$0xff]  }
  0x5e   : > { %v1140_v27 = vld [vmem:[%s1435_s6 + $0xc0] ss:$16 sps:$4 sm:$0xff]   ;;  %v1141_v28 = vld [vmem:[%s1435_s6 + $0xc8] ss:$16 sps:$4 sm:$0xff]   ;;  %v1142_v29 = vld [vmem:[%s1435_s6 + $0xe4] ss:$16 sps:$4 sm:$0xff]  }
  0x5f   : > { %v1144_v30 = vld [vmem:[%s1435_s6 + $0xec] ss:$16 sps:$4 sm:$0xff]   ;;  %v1146_v31 = vld [vmem:[%s1435_s6 + $0xe0] ss:$16 sps:$4 sm:$0xff]   ;;  %v1147_v32 = vld [vmem:[%s1435_s6 + $0xe8] ss:$16 sps:$4 sm:$0xff]  }
  0x60   : > { %537 = vmatpush1.bf16.msra.mxu0 %v1116_v11  ;;  %590 = vmatpush1.bf16.msra.mxu1 %v1117_v12  ;;  %v1148_v33 = vld [vmem:[%s1535_s0] sm:$0xff]   ;;  %v1149_v34 = vld [vmem:[%s1535_s0 + $0x8] sm:$0xff]   ;;  %v692_v36 = vshrl.u32 %v691_v35, 7  ;;  %s977_s27 = sshll.u32 %s1431_s12, 6  ;;  %p1548_p11 = scmp.ne.s32.totalorder %s1542_s25, 0 }
  0x61   : > { %538 = vmatprep.subr.bf16.mxu0 %v1118_v13  ;;  %591 = vmatprep.subr.bf16.mxu1 %v1120_v14  ;;  %v689_v39 = vld [vmem:[%s1443_s20] sm:$0xf]  ;;  %s1493_s28 = scalar_lea.vmem [#allocation7], %s977_s27  ;;  %s1035_s29 = sshll.u32 (%p1548_p11), %s1256_s15, 4 }
  0x62   : > { %v693_v37 = vsub.s32 0, %v692_v36  ;;  %v701_v38 = vsub.s32 2, %v692_v36  ;;  %v697_v40 = vsub.s32 1, %v692_v36  ;;  %v705_v41 = vsub.s32 3, %v692_v36  ;;  %s811_s5 = scalar_lea.vmem (%p1548_p11), %s1538_s3, %s1035_s29 }
  0x64   : > { %539 = vmatpush1.bf16.msra.mxu0 %v1122_v15  ;;  %592 = vmatpush1.bf16.msra.mxu1 %v1123_v16  ;;  %v694_v42 = vrot.slane %v689_v39, %v693_v37  ;;  %v702_v43 = vrot.slane %v689_v39, %v701_v38  ;;  %v698_v44 = vrot.slane %v689_v39, %v697_v40 }
  0x65   : > { %540 = vmatprep.subr.bf16.mxu0 %v1124_v17  ;;  %593 = vmatprep.subr.bf16.mxu1 %v1126_v18  ;;  %v706_v45 = vrot.slane %v689_v39, %v705_v41 }
  0x68   : > { %541 = vmatpush1.bf16.msra.mxu0 %v1128_v19  ;;  %594 = vmatpush1.bf16.msra.mxu1 %v1129_v20 }
  0x69   : > { %542 = vmatprep.subr.bf16.mxu0 %v1130_v21  ;;  %595 = vmatprep.subr.bf16.mxu1 %v1132_v22 }
  0x6c   : > { %543 = vmatpush1.bf16.msra.mxu0 %v1134_v23  ;;  %596 = vmatpush1.bf16.msra.mxu1 %v1135_v24 }
  0x6d   : > { %544 = vmatprep.subr.bf16.mxu0 %v1136_v25  ;;  %597 = vmatprep.subr.bf16.mxu1 %v1138_v26 }
  0x70   : > { %545 = vmatpush1.bf16.msra.mxu0 %v1140_v27  ;;  %598 = vmatpush1.bf16.msra.mxu1 %v1141_v28 }
  0x71   : > { %546 = vmatprep.subr.bf16.mxu0 %v1142_v29  ;;  %599 = vmatprep.subr.bf16.mxu1 %v1144_v30 }
  0x74   : > { %547 = vmatpush1.bf16.msra.mxu0 %v1146_v31  ;;  %600 = vmatpush1.bf16.msra.mxu1 %v1147_v32 }
  0x77   : > { %565 = vmatmul.mubr.bf16.vlgmr.msra.gmra.mrb[0].mxu0 %v1148_v33  ;;  %618 = vmatmul.mubr.bf16.vlgmr.msra.gmra.mrb[0].mxu1 %v1148_v33 }
  0x78   : > { %574 = vmatprep.mubr.bf16.mxu0 %v1271_v0  ;;  %627 = vmatprep.mubr.bf16.mxu1 %v1271_v0 }
  0x7f   : > { %575 = vmatmul.mubr.bf16.gmra.mrb[4].mxu0 %v1149_v34  ;;  %628 = vmatmul.mubr.bf16.gmra.mrb[4].mxu1 %v1149_v34 }
 0x14a   : > { %v566_v46 = vpop.f32.mrb[0].mxu0  ;;  %v619_v47 = vpop.f32.mrb[0].mxu1 }
 0x14b   : > { %v711_v48 = vadd.f32 %v694_v42, %v566_v46  ;;  %v713_v49 = vadd.f32 %v702_v43, %v619_v47  ;;  %v568_v50 = vpop.f32.mrb[1].mxu0  ;;  %v621_v51 = vpop.f32.mrb[1].mxu1 }
 0x14c   : > { %v712_v52 = vadd.f32 %v698_v44, %v568_v50  ;;  %v714_v53 = vadd.f32 %v706_v45, %v621_v51  ;;  %v570_v54 = vpop.f32.mrb[2].mxu0  ;;  %v623_v55 = vpop.f32.mrb[2].mxu1 }
 0x14d   : > { %v727_v56 = vmax.f32 %v711_v48, 0.0  ;;  %v729_v57 = vmax.f32 %v713_v49, 0.0  ;;  %v715_v58 = vadd.f32 %v694_v42, %v570_v54  ;;  %v717_v59 = vadd.f32 %v702_v43, %v623_v55  ;;  %v572_v60 = vpop.f32.mrb[3].mxu0  ;;  %v625_v61 = vpop.f32.mrb[3].mxu1 }
 0x14e   : > { %v728_v62 = vmax.f32 %v712_v52, 0.0  ;;  %v730_v63 = vmax.f32 %v714_v53, 0.0  ;;  %v716_v0 = vadd.f32 %v698_v44, %v572_v60  ;;  %v718_v1 = vadd.f32 %v706_v45, %v625_v61 }
 0x14f   : > { %v731_v2 = vmax.f32 %v715_v58, 0.0  ;;  %v733_v3 = vmax.f32 %v717_v59, 0.0 }
 0x150   : > { %v1027_v4 = vpack.c.bf16 %v728_v62, %v727_v56  ;;  %v1028_v5 = vpack.c.bf16 %v730_v63, %v729_v57  ;;  %v732_v6 = vmax.f32 %v716_v0, 0.0  ;;  %v734_v7 = vmax.f32 %v718_v1, 0.0 }
 0x152   : > { %791 = vst [vmem:[%s1493_s28] sm:$0xff] %v1027_v4  ;;  %792 = vst [vmem:[%s1493_s28 + $0x8] sm:$0xff] %v1028_v5  ;;  %v1029_v8 = vpack.c.bf16 %v732_v6, %v731_v2  ;;  %v1030_v9 = vpack.c.bf16 %v734_v7, %v733_v3  ;;  %v576_v10 = vpop.f32.mrb[4].mxu0  ;;  %v629_v11 = vpop.f32.mrb[4].mxu1 }
 0x153   : > { %v719_v12 = vadd.f32 %v694_v42, %v576_v10  ;;  %v721_v13 = vadd.f32 %v702_v43, %v629_v11  ;;  %v578_v14 = vpop.f32.mrb[5].mxu0  ;;  %v631_v15 = vpop.f32.mrb[5].mxu1 }
 0x154   : > { %793 = vst [vmem:[%s1493_s28 + $0x10] sm:$0xff] %v1029_v8  ;;  %794 = vst [vmem:[%s1493_s28 + $0x18] sm:$0xff] %v1030_v9  ;;  %v720_v16 = vadd.f32 %v698_v44, %v578_v14  ;;  %v722_v17 = vadd.f32 %v706_v45, %v631_v15  ;;  %v580_v18 = vpop.f32.mrb[6].mxu0  ;;  %v633_v19 = vpop.f32.mrb[6].mxu1 }
 0x155   : > { %v735_v20 = vmax.f32 %v719_v12, 0.0  ;;  %v737_v21 = vmax.f32 %v721_v13, 0.0  ;;  %v723_v22 = vadd.f32 %v694_v42, %v580_v18  ;;  %v725_v23 = vadd.f32 %v702_v43, %v633_v19  ;;  %v582_v24 = vpop.f32.mrb[7].mxu0  ;;  %v635_v25 = vpop.f32.mrb[7].mxu1 }
 0x156   : > { %v736_v26 = vmax.f32 %v720_v16, 0.0  ;;  %v738_v27 = vmax.f32 %v722_v17, 0.0  ;;  %v724_v28 = vadd.f32 %v698_v44, %v582_v24  ;;  %v726_v29 = vadd.f32 %v706_v45, %v635_v25  ;;  %805 = sbr.rel (!%p1548_p11) target bundleno = 357 (0x165), region = 52 }
 0x157   : > { %v739_v30 = vmax.f32 %v723_v22, 0.0  ;;  %v741_v31 = vmax.f32 %v725_v23, 0.0 }
 0x158   : > { %v1031_v32 = vpack.c.bf16 %v736_v26, %v735_v20  ;;  %v1032_v33 = vpack.c.bf16 %v738_v27, %v737_v21  ;;  %v740_v34 = vmax.f32 %v724_v28, 0.0  ;;  %v742_v35 = vmax.f32 %v726_v29, 0.0 }
 0x159   : > { %v824_v38 = vld [vmem:[%s1493_s28] sm:$0xff] (%p1548_p11)  ;;  %v826_v39 = vld [vmem:[%s1493_s28 + $0x8] sm:$0xff] (%p1548_p11) }
 0x15a   : > { %795 = vst [vmem:[%s1493_s28 + $0x20] sm:$0xff] %v1031_v32  ;;  %796 = vst [vmem:[%s1493_s28 + $0x28] sm:$0xff] %v1032_v33  ;;  %v1033_v36 = vpack.c.bf16 %v740_v34, %v739_v30  ;;  %v1034_v37 = vpack.c.bf16 %v742_v35, %v741_v31 }
 0x15b   : > { %v828_v40 = vld [vmem:[%s1493_s28 + $0x10] sm:$0xff] (%p1548_p11)  ;;  %v830_v41 = vld [vmem:[%s1493_s28 + $0x18] sm:$0xff] (%p1548_p11)  ;;  %825 = vst [vmem:[%s811_s5] sm:$0xff] (%p1548_p11), %v824_v38  ;;  %827 = vst [vmem:[%s811_s5 + $0x8] sm:$0xff] (%p1548_p11), %v826_v39 }
 0x15c   : > { %797 = vst [vmem:[%s1493_s28 + $0x30] sm:$0xff] %v1033_v36  ;;  %798 = vst [vmem:[%s1493_s28 + $0x38] sm:$0xff] %v1034_v37 }
 0x15d   : > { %829 = vst [vmem:[%s811_s5 + $0x40] sm:$0xff] %v828_v40  ;;  %831 = vst [vmem:[%s811_s5 + $0x48] sm:$0xff] %v830_v41 }
 0x161   : > { %v832_v42 = vld [vmem:[%s1493_s28 + $0x20] sm:$0xff]  ;;  %v834_v43 = vld [vmem:[%s1493_s28 + $0x28] sm:$0xff] }
 0x162   : > { %833 = vst [vmem:[%s811_s5 + $0x80] sm:$0xff] %v832_v42  ;;  %835 = vst [vmem:[%s811_s5 + $0x88] sm:$0xff] %v834_v43 }
 0x163   : > { %v836_v44 = vld [vmem:[%s1493_s28 + $0x30] sm:$0xff]  ;;  %v838_v45 = vld [vmem:[%s1493_s28 + $0x38] sm:$0xff] }
 0x164   : > { %837 = vst [vmem:[%s811_s5 + $0xc0] sm:$0xff] %v836_v44  ;;  %839 = vst [vmem:[%s811_s5 + $0xc8] sm:$0xff] %v838_v45 }
 0x165 PF: > { %s19_s17 = sadd.s32 1, %s1264_s17   ;;  %s1549_s12 = smov %s1248_s13 }
 0x166   : > { %p16_p0 = scmp.ge.s32.totalorder %s19_s17, 6   ;;  %s1550_s13 = smov %s1252_s14 }
 0x167   : > { %s1551_s14 = smov %s1340_s24  ;;  %s1552_s15 = smov %s1260_s16 }
 0x168   : > { %s1553_s16 = smov %s1555_s19  ;;  %18 = sbr.rel (!%p16_p0) target bundleno = 6 (0x6), region = 119 }
 0x16f   :  { %855 = vsyncpa [#allocation4], 1 }
 0x170   :  { %857 = vsyncpa [#allocation4 + $0x1], 1 }
 0x171   :  { %858 = vsyncpa [#allocation6], 1 }
 0x172   :  { %860 = vsyncpa [#allocation6 + $0x1], 1 }

// kernel: seq_context.8
= control target key start
LH: loop header
LB: loop body
LE: loop exit
PB: predicated region body
PF: predicated region fallthrough
CT: control target
= control target key end

     0   :  { %s1309_s21 = smov 0   ;;  %s1311_s22 = smov 0   ;;  %s1445_s0 = inlined_call_operand.vmem [shape: bf16[32,2048], index: 0, kind: input, shape index: {}]   ;;  %s1446_s1 = inlined_call_operand.vmem [shape: bf16[2048,128], index: 1, kind: input, shape index: {}]   ;;  %s1447_s2 = inlined_call_operand.vmem [shape: f32[1,128], index: 2, kind: input, shape index: {}]   ;;  %s1448_s3 = inlined_call_operand.vmem [shape: bf16[32,128], index: 3, kind: input, shape index: {}]   ;;  %s1449_s4 = inlined_call_operand.vmem [shape: f32[1,128], index: 4, kind: input, shape index: {}]   ;;  %s1450_s5 = inlined_call_operand.vmem [shape: f32[1,128], index: 5, kind: input, shape index: {}]   ;;  %s1451_s6 = inlined_call_operand.vmem [shape: bf16[32,128], index: 6, kind: output, shape index: {}]  }
   0x1   :  { %s1313_s23 = smov 0   ;;  %s1315_s24 = smov 0  }
   0x2   :  { %s1317_s25 = smov 0  }
   0x3 LB: > { %s25_s26 = sadd.s32 1, %s1267_s24  ;;  %p44_p1 = scmp.ne.s32.totalorder %s1259_s22, %s1255_s21  ;;  %s1271_s25 = sphi %s1317_s25, %s16_s25   ;;  %s1267_s24 = sphi %s1315_s24, %s1455_s24   ;;  %s1263_s23 = sphi %s1313_s23, %s1454_s23   ;;  %s1259_s22 = sphi %s1311_s22, %s1453_s22   ;;  %s1255_s21 = sphi %s1309_s21, %s1452_s21  }
   0x4   : > { %p26_p0 = scmp.ge.s32.totalorder %s25_s26, 4  ;;  %p45_p2 = scmp.eq.s32.totalorder %s1271_s25, 0 }
   0x5   : > { %s37_s28 = sadd.s32 1, %s1259_s22  ;;  %p998_p5 = scmp.ge.s32.totalorder %s1271_s25, 4 }
   0x6   : > { %s1457_s26 = smov (%p26_p0, %s25_s26), 0  ;;  %p46_p3 = por %p45_p2, %p44_p1 }
   0x7   : > { %s33_s27 = ssub.s32 %s1267_s24, %s1457_s26  ;;  %229 = sbr.rel (%p998_p5) target bundleno = 22 (0x16), region = 32 }
   0x8   : > { %p35_p4 = scmp.eq.s32.totalorder %s33_s27, 0 }
   0xa   : > { %s1344_s29 = scalar_select %p35_p4, %s1259_s22, %s37_s28  }
   0xe   : > { %232 = sbr.rel (!%p46_p3) target bundleno = 22 (0x16), region = 36  ;;  %s234_s30 = sand.u32 (%p46_p3), 1, %s1259_s22  }
   0xf   : > { %s1059_s7 = sshll.u32 (%p46_p3), %s1267_s24, 4  ;;  %s999_s8 = sshll.u32 (%p46_p3), %s234_s30, 6 }
  0x10   : > { %s242_s11 = scalar_lea.vmem (%p46_p3), %s1445_s0, %s1059_s7  ;;  %s236_s12 = scalar_lea.vmem (%p46_p3), [#allocation3], %s999_s8 }
  0x11   : > { %v255_v0 = vld [vmem:[%s242_s11] sm:$0xff] (%p46_p3)  ;;  %v257_v1 = vld [vmem:[%s242_s11 + $0x8] sm:$0xff] (%p46_p3) }
  0x12   : > { %v259_v2 = vld [vmem:[%s242_s11 + $0x40] sm:$0xff] (%p46_p3)  ;;  %256 = vst [vmem:[%s236_s12] sm:$0xff] (%p46_p3), %v255_v0  ;;  %258 = vst [vmem:[%s236_s12 + $0x8] sm:$0xff] (%p46_p3), %v257_v1  ;;  %v261_v3 = vld [vmem:[%s242_s11 + $0x48] sm:$0xff] (%p46_p3) }
  0x13   : > { %260 = vst [vmem:[%s236_s12 + $0x10] sm:$0xff] (%p46_p3), %v259_v2  ;;  %v263_v4 = vld [vmem:[%s242_s11 + $0x80] sm:$0xff] (%p46_p3)  ;;  %v265_v5 = vld [vmem:[%s242_s11 + $0x88] sm:$0xff] (%p46_p3)  ;;  %262 = vst [vmem:[%s236_s12 + $0x18] sm:$0xff] (%p46_p3), %v261_v3 }
  0x14   : > { %264 = vst [vmem:[%s236_s12 + $0x20] sm:$0xff] (%p46_p3), %v263_v4  ;;  %266 = vst [vmem:[%s236_s12 + $0x28] sm:$0xff] (%p46_p3), %v265_v5  ;;  %v267_v6 = vld [vmem:[%s242_s11 + $0xc0] sm:$0xff] (%p46_p3)  ;;  %v269_v7 = vld [vmem:[%s242_s11 + $0xc8] sm:$0xff] (%p46_p3) }
  0x15   : > { %268 = vst [vmem:[%s236_s12 + $0x30] sm:$0xff] %v267_v6  ;;  %270 = vst [vmem:[%s236_s12 + $0x38] sm:$0xff] %v269_v7 }
  0x16 PF: > { %p1002_p6 = scmp.ge.s32.totalorder %s1271_s25, 1  ;;  %p284_p7 = scmp.lt.s32.totalorder %s1271_s25, 5 }
  0x18   : > { %p285_p8 = pnand %p1002_p6, %p284_p7 }
  0x19   : > { %s291_s13 = sand.u32 (!%p285_p8), 1, %s1255_s21   ;;  %s1004_s14 = sshll.u32 (!%p285_p8), %s1263_s23, 6 }
  0x1a   : > { %288 = sbr.rel (%p285_p8) target bundleno = 633 (0x279), region = 63  ;;  %s1003_s15 = sshll.u32 (!%p285_p8), %s291_s13, 6 }
  0x1b   : > { %p333_p9 = scmp.lt.s32.totalorder (!%p285_p8), %s1004_s14, 255  ;;  %s1361_s20 = scalar_lea.vmem (!%p285_p8), [#allocation3], %s1003_s15 }
  0x1c   : > { %p1006_p10 = scmp.ne.s32.totalorder (!%p285_p8), %s1263_s23, 0 }
  0x21   : > { %s1459_s14 = smov (!%p333_p9, %s1004_s14), 255  ;;  %354 = sbr.rel (%p1006_p10) target bundleno = 40 (0x28), region = 71 }
  0x22   : > { %s1005_s16 = sshll.u32 %s1459_s14, 2  ;;  %v1273_v8 = vmov (!%p1006_p10), 0.0  }
  0x23   : > { %s1359_s19 = scalar_lea.vmem %s1446_s1, %s1005_s16  ;;  %355 = vst [vmem:[#allocation2] sm:$0xff] (!%p1006_p10), %v1273_v8  ;;  %356 = vst [vmem:[#allocation2 + $0x8] sm:$0xff] (!%p1006_p10), %v1273_v8 }
  0x24   : > { %357 = vst [vmem:[#allocation2 + $0x10] sm:$0xff] (!%p1006_p10), %v1273_v8  ;;  %358 = vst [vmem:[#allocation2 + $0x18] sm:$0xff] (!%p1006_p10), %v1273_v8 }
  0x28 PF: > { %v1181_v9 = vld [vmem:[%s1359_s19 + $0x40] sm:$0xff]   ;;  %v1185_v13 = vld [vmem:[%s1359_s19 + $0x48] sm:$0xff]   ;;  %v1189_v17 = vld [vmem:[%s1359_s19 + $0x50] sm:$0xff]   ;;  %p1047_p11 = scmp.ne.s32.totalorder %s1263_s23, 3 }
  0x29   : > { %v1182_v10 = vld [vmem:[%s1359_s19 + $0xc0] sm:$0xff]   ;;  %1084 = vmatprep.subr.bf16.mxu0 %v1181_v9  ;;  %v1186_v14 = vld [vmem:[%s1359_s19 + $0xc8] sm:$0xff]   ;;  %v1190_v18 = vld [vmem:[%s1359_s19 + $0xd0] sm:$0xff]  }
  0x2a   : > { %v1183_v11 = vld [vmem:[%s1359_s19] sm:$0xff]   ;;  %1112 = vmatprep.subr.bf16.mxu1 %v1182_v10  ;;  %v1187_v15 = vld [vmem:[%s1359_s19 + $0x8] sm:$0xff]   ;;  %v1191_v19 = vld [vmem:[%s1359_s19 + $0x10] sm:$0xff]  }
  0x2b   : > { %v1184_v12 = vld [vmem:[%s1359_s19 + $0x80] sm:$0xff]   ;;  %1085 = vmatpush3.bf16.msra.mxu0 %v1183_v11  ;;  %v1188_v16 = vld [vmem:[%s1359_s19 + $0x88] sm:$0xff]   ;;  %v1192_v20 = vld [vmem:[%s1359_s19 + $0x90] sm:$0xff]  }
  0x2c   : > { %1113 = vmatpush3.bf16.msra.mxu1 %v1184_v12  ;;  %1086 = vmatprep.subr.bf16.mxu0 %v1185_v13  ;;  %v1193_v21 = vld [vmem:[%s1359_s19 + $0x58] sm:$0xff]   ;;  %v1197_v25 = vld [vmem:[%s1359_s19 + $0x60] sm:$0xff]   ;;  %v1201_v29 = vld [vmem:[%s1359_s19 + $0x68] sm:$0xff]  }
  0x2d   : > { %1114 = vmatprep.subr.bf16.mxu1 %v1186_v14  ;;  %v1194_v22 = vld [vmem:[%s1359_s19 + $0xd8] sm:$0xff]   ;;  %v1198_v26 = vld [vmem:[%s1359_s19 + $0xe0] sm:$0xff]   ;;  %v1202_v30 = vld [vmem:[%s1359_s19 + $0xe8] sm:$0xff]  }
  0x2e   : > { %v1195_v23 = vld [vmem:[%s1359_s19 + $0x18] sm:$0xff]   ;;  %v1199_v27 = vld [vmem:[%s1359_s19 + $0x20] sm:$0xff]   ;;  %v1203_v31 = vld [vmem:[%s1359_s19 + $0x28] sm:$0xff]  }
  0x2f   : > { %1087 = vmatpush3.bf16.msra.mxu0 %v1187_v15  ;;  %v1196_v24 = vld [vmem:[%s1359_s19 + $0x98] sm:$0xff]   ;;  %v1200_v28 = vld [vmem:[%s1359_s19 + $0xa0] sm:$0xff]   ;;  %v1204_v32 = vld [vmem:[%s1359_s19 + $0xa8] sm:$0xff]  }
  0x30   : > { %1115 = vmatpush3.bf16.msra.mxu1 %v1188_v16  ;;  %1088 = vmatprep.subr.bf16.mxu0 %v1189_v17  ;;  %v1205_v33 = vld [vmem:[%s1359_s19 + $0x70] sm:$0xff]   ;;  %v1209_v37 = vld [vmem:[%s1359_s19 + $0x78] sm:$0xff]   ;;  %v359_v58 = vld [vmem:[#allocation2] sm:$0xff] }
  0x31   : > { %1116 = vmatprep.subr.bf16.mxu1 %v1190_v18  ;;  %v1206_v34 = vld [vmem:[%s1359_s19 + $0xf0] sm:$0xff]   ;;  %v1210_v38 = vld [vmem:[%s1359_s19 + $0xf8] sm:$0xff]   ;;  %v360_v63 = vld [vmem:[#allocation2 + $0x8] sm:$0xff] }
  0x32   : > { %v1207_v35 = vld [vmem:[%s1359_s19 + $0x30] sm:$0xff]   ;;  %v1211_v39 = vld [vmem:[%s1359_s19 + $0x38] sm:$0xff]  }
  0x33   : > { %1089 = vmatpush3.bf16.msra.mxu0 %v1191_v19  ;;  %v1208_v36 = vld [vmem:[%s1359_s19 + $0xb0] sm:$0xff]   ;;  %v1212_v40 = vld [vmem:[%s1359_s19 + $0xb8] sm:$0xff]  }
  0x34   : > { %1117 = vmatpush3.bf16.msra.mxu1 %v1192_v20  ;;  %1090 = vmatprep.subr.bf16.mxu0 %v1193_v21  ;;  %v1213_v41 = vld [vmem:[%s1361_s20] ss:$16 sps:$4 sm:$0xff]   ;;  %v1215_v42 = vld [vmem:[%s1361_s20 + $0x4] ss:$16 sps:$4 sm:$0xff]   ;;  %v1216_v43 = vld [vmem:[%s1361_s20 + $0x8] ss:$16 sps:$4 sm:$0xff]  }
  0x35   : > { %1118 = vmatprep.subr.bf16.mxu1 %v1194_v22  ;;  %v1218_v44 = vld [vmem:[%s1361_s20 + $0xc] ss:$16 sps:$4 sm:$0xff]   ;;  %699 = vmatprep.mubr.bf16.mxu0 %v1215_v42  ;;  %v1219_v45 = vld [vmem:[%s1361_s20 + $0x24] ss:$16 sps:$4 sm:$0xff]   ;;  %v1223_v47 = vld [vmem:[%s1361_s20 + $0x20] ss:$16 sps:$4 sm:$0xff]  }
  0x36   : > { %748 = vmatprep.mubr.bf16.mxu1 %v1218_v44  ;;  %v1221_v46 = vld [vmem:[%s1361_s20 + $0x2c] ss:$16 sps:$4 sm:$0xff]   ;;  %v1224_v48 = vld [vmem:[%s1361_s20 + $0x28] ss:$16 sps:$4 sm:$0xff]   ;;  %v361_v12 = vld [vmem:[#allocation2 + $0x10] sm:$0xff] }
  0x37   : > { %1091 = vmatpush3.bf16.msra.mxu0 %v1195_v23  ;;  %v362_v17 = vld [vmem:[#allocation2 + $0x18] sm:$0xff]  ;;  %v1048_v22 = vld [vmem:[%s1447_s2] ss:$0 sm:$0xff] (!%p1047_p11) }
  0x38   : > { %1119 = vmatpush3.bf16.msra.mxu1 %v1196_v24  ;;  %1092 = vmatprep.subr.bf16.mxu0 %v1197_v25  ;;  %v1065_v23 = vld [vmem:[%s1448_s3] sm:$0xff] (!%p1047_p11)  }
  0x39   : > { %1120 = vmatprep.subr.bf16.mxu1 %v1198_v26  ;;  %v1066_v25 = vunpack.c.l.bf16 (!%p1047_p11), %v1065_v23 }
  0x3b   : > { %1093 = vmatpush3.bf16.msra.mxu0 %v1199_v27  ;;  %v1082_v27 = vld [vmem:[%s1448_s3 + $0x8] sm:$0xff] (!%p1047_p11)  }
  0x3c   : > { %1121 = vmatpush3.bf16.msra.mxu1 %v1200_v28  ;;  %1094 = vmatprep.subr.bf16.mxu0 %v1201_v29  ;;  %v1067_v29 = vunpack.c.h.bf16 (!%p1047_p11), %v1065_v23 }
  0x3d   : > { %1122 = vmatprep.subr.bf16.mxu1 %v1202_v30 }
  0x3f   : > { %1095 = vmatpush3.bf16.msra.mxu0 %v1203_v31  ;;  %v1070_v31 = vunpack.c.l.bf16 (!%p1047_p11), %v1082_v27 }
  0x40   : > { %1123 = vmatpush3.bf16.msra.mxu1 %v1204_v32  ;;  %1096 = vmatprep.subr.bf16.mxu0 %v1205_v33 }
  0x41   : > { %1124 = vmatprep.subr.bf16.mxu1 %v1206_v34  ;;  %v1071_v34 = vunpack.c.h.bf16 (!%p1047_p11), %v1082_v27 }
  0x43   : > { %1097 = vmatpush3.bf16.msra.mxu0 %v1207_v35 }
  0x44   : > { %1125 = vmatpush3.bf16.msra.mxu1 %v1208_v36  ;;  %1098 = vmatprep.subr.bf16.mxu0 %v1209_v37 }
  0x45   : > { %1126 = vmatprep.subr.bf16.mxu1 %v1210_v38 }
  0x47   : > { %1099 = vmatpush3.bf16.msra.mxu0 %v1211_v39 }
  0x48   : > { %1127 = vmatpush3.bf16.msra.mxu1 %v1212_v40  ;;  %v820_v40 = vlaneseq (!%p1047_p11) }
  0x4a   : > { %700 = vmatmul.mubr.bf16.vlgmr.msra.gmra.mrb[0].mxu0 %v1213_v41  ;;  %v821_v41 = vand.u32 (!%p1047_p11), 127, %v820_v40 }
  0x4b   : > { %749 = vmatmul.mubr.bf16.vlgmr.msra.gmra.mrb[0].mxu1 %v1216_v43  ;;  %707 = vmatprep.mubr.bf16.mxu0 %v1219_v45 }
  0x4c   : > { %756 = vmatprep.mubr.bf16.mxu1 %v1221_v46  ;;  %vm822_vm0 = vcmp.lt.s32.totalorder (!%p1047_p11), %v821_v41, 32 }
  0x52   : > { %708 = vmatmul.mubr.bf16.gmra.mrb[4].mxu0 %v1223_v47 }
  0x53   : > { %757 = vmatmul.mubr.bf16.gmra.mrb[4].mxu1 %v1224_v48 }
 0x11d   : > { %v1100_v49 = vpop.f32.mrb[0].mxu0 }
 0x11e   : > { %v1128_v50 = vpop.f32.mrb[0].mxu1  ;;  %v1101_v51 = vpop.f32.mrb[1].mxu0 }
 0x11f   : > { %v1102_v52 = vadd.f32 %v1101_v51, %v1100_v49  ;;  %v1129_v53 = vpop.f32.mrb[1].mxu1  ;;  %v1103_v54 = vpop.f32.mrb[2].mxu0 }
 0x120   : > { %v1130_v55 = vadd.f32 %v1129_v53, %v1128_v50  ;;  %v1131_v56 = vpop.f32.mrb[2].mxu1  ;;  %v1104_v57 = vpop.f32.mrb[3].mxu0 }
 0x121   : > { %v1105_v59 = vadd.f32 %v1104_v57, %v1103_v54  ;;  %v1132_v60 = vpop.f32.mrb[3].mxu1 }
 0x122   : > { %v751_v61 = vadd.f32 %v1130_v55, %v1102_v52  ;;  %v1133_v62 = vadd.f32 %v1132_v60, %v1131_v56 }
 0x124   : > { %v765_v0 = vadd.f32 %v751_v61, %v359_v58  ;;  %v754_v1 = vadd.f32 %v1133_v62, %v1105_v59 }
 0x125   : > { %v1106_v2 = vpop.f32.mrb[4].mxu0 }
 0x126   : > { %769 = vst [vmem:[#allocation2] sm:$0xff] %v765_v0  ;;  %v766_v3 = vadd.f32 %v754_v1, %v360_v63  ;;  %v1134_v4 = vpop.f32.mrb[4].mxu1  ;;  %v1107_v5 = vpop.f32.mrb[5].mxu0 }
 0x127   : > { %v1108_v6 = vadd.f32 %v1107_v5, %v1106_v2  ;;  %v1135_v7 = vpop.f32.mrb[5].mxu1  ;;  %v1109_v8 = vpop.f32.mrb[6].mxu0 }
 0x128   : > { %770 = vst [vmem:[#allocation2 + $0x8] sm:$0xff] %v766_v3  ;;  %v1136_v9 = vadd.f32 %v1135_v7, %v1134_v4  ;;  %v1137_v10 = vpop.f32.mrb[6].mxu1  ;;  %v1110_v11 = vpop.f32.mrb[7].mxu0 }
 0x129   : > { %v1111_v13 = vadd.f32 %v1110_v11, %v1109_v8  ;;  %v1138_v14 = vpop.f32.mrb[7].mxu1 }
 0x12a   : > { %v759_v15 = vadd.f32 %v1136_v9, %v1108_v6  ;;  %v1139_v16 = vadd.f32 %v1138_v14, %v1137_v10  ;;  %776 = sbr.rel (%p1047_p11) target bundleno = 633 (0x279), region = 75 }
 0x12c   : > { %v767_v18 = vadd.f32 %v759_v15, %v361_v12  ;;  %v762_v19 = vadd.f32 %v1139_v16, %v1111_v13  ;;  %v1049_v12 = vld [vmem:[%s1449_s4] ss:$0 sm:$0xff] (!%p1047_p11) }
 0x12d   : > { %v777_v21 = vld [vmem:[#allocation2] sm:$0xff] (!%p1047_p11) }
 0x12e   : > { %771 = vst [vmem:[#allocation2 + $0x10] sm:$0xff] %v767_v18  ;;  %v768_v20 = vadd.f32 %v762_v19, %v362_v17  ;;  %v788_v24 = vadd.f32 (!%p1047_p11), %v1048_v22, %v777_v21  ;;  %v1050_v17 = vld [vmem:[%s1450_s5] ss:$0 sm:$0xff] (!%p1047_p11) }
 0x12f   : > { %v778_v28 = vld [vmem:[#allocation2 + $0x8] sm:$0xff] (!%p1047_p11) }
 0x130   : > { %772 = vst [vmem:[#allocation2 + $0x18] sm:$0xff] %v768_v20  ;;  %v789_v32 = vadd.f32 (!%p1047_p11), %v1048_v22, %v778_v28  ;;  %v800_v35 = vadd.f32 (!%p1047_p11), %v1066_v25, %v788_v24 }
 0x132   : > { %804 = vadd.xlane.f32.xlu0 %v800_v35  ;;  %v801_v38 = vadd.f32 %v1067_v29, %v789_v32 }
 0x135   : > { %v779_v26 = vld [vmem:[#allocation2 + $0x10] sm:$0xff] }
 0x136   : > { %v790_v30 = vadd.f32 %v1048_v22, %v779_v26  ;;  %806 = vadd.xlane.f32.xlu0 %v801_v38 }
 0x137   : > { %v780_v33 = vld [vmem:[#allocation2 + $0x18] sm:$0xff] }
 0x138   : > { %v791_v36 = vadd.f32 %v1048_v22, %v780_v33  ;;  %v802_v37 = vadd.f32 %v1070_v31, %v790_v30 }
 0x13a   : > { %808 = vadd.xlane.f32.xlu1 %v802_v37  ;;  %v803_v39 = vadd.f32 %v1071_v34, %v791_v36 }
 0x13e   : > { %810 = vadd.xlane.f32.xlu1 %v803_v39 }
 0x1bf   : > { %v805_v42 = vpop.xlane.xlu0 %804 }
 0x1c0   : > { %v812_v43 = vmul.f32 0.03125, %v805_v42 }
 0x1c2   : > { %v816_v46 = vsub.f32 %v800_v35, %v812_v43 }
 0x1c3   : > { %v807_v48 = vpop.xlane.xlu0 %806 }
 0x1c4   : > { %v813_v49 = vmul.f32 0.03125, %v807_v48  ;;  %v823_v51 = vsel %vm822_vm0, %v816_v46, 0.0 }
 0x1c5   : > { %v827_v53 = vmul.f32 %v823_v51, %v823_v51 }
 0x1c6   : > { %v817_v55 = vsub.f32 %v801_v38, %v813_v49 }
 0x1c7   : > { %v809_v44 = vpop.xlane.xlu1 %808  ;;  %831 = vadd.xlane.f32.xlu0 %v827_v53 }
 0x1c8   : > { %v814_v45 = vmul.f32 0.03125, %v809_v44  ;;  %v824_v58 = vsel %vm822_vm0, %v817_v55, 0.0 }
 0x1c9   : > { %v828_v59 = vmul.f32 %v824_v58, %v824_v58 }
 0x1ca   : > { %v818_v47 = vsub.f32 %v802_v37, %v814_v45 }
 0x1cb   : > { %v811_v50 = vpop.xlane.xlu1 %810  ;;  %833 = vadd.xlane.f32.xlu1 %v828_v59 }
 0x1cc   : > { %v815_v52 = vmul.f32 0.03125, %v811_v50  ;;  %v825_v54 = vsel %vm822_vm0, %v818_v47, 0.0 }
 0x1cd   : > { %v829_v57 = vmul.f32 %v825_v54, %v825_v54 }
 0x1ce   : > { %v819_v56 = vsub.f32 %v803_v39, %v815_v52 }
 0x1cf   : > { %835 = vadd.xlane.f32.xlu0 %v829_v57 }
 0x1d0   : > { %v826_v60 = vsel %vm822_vm0, %v819_v56, 0.0 }
 0x1d1   : > { %v830_v61 = vmul.f32 %v826_v60, %v826_v60 }
 0x1d3   : > { %837 = vadd.xlane.f32.xlu1 %v830_v61 }
 0x254   : > { %v832_v62 = vpop.xlane.xlu0 %831 }
 0x255   : > { %v839_v63 = vmul.f32 0.03125, %v832_v62 }
 0x257   : > { %v843_v0 = vadd.f32 1e-05, %v839_v63 }
 0x258   : > { %v834_v1 = vpop.xlane.xlu1 %833 }
 0x259   : > { %1225 = vrsqrt.f32 %v843_v0  ;;  %v840_v3 = vmul.f32 0.03125, %v834_v1 }
 0x25b   : > { %v844_v5 = vadd.f32 1e-05, %v840_v3 }
 0x25c   : > { %v836_v2 = vpop.xlane.xlu0 %835 }
 0x25d   : > { %v841_v4 = vmul.f32 0.03125, %v836_v2  ;;  %1227 = vrsqrt.f32 %v844_v5 }
 0x25f   : > { %v845_v6 = vadd.f32 1e-05, %v841_v4 }
 0x260   : > { %v838_v7 = vpop.xlane.xlu1 %837 }
 0x261   : > { %v842_v8 = vmul.f32 0.03125, %v838_v7  ;;  %1229 = vrsqrt.f32 %v845_v6 }
 0x263   : > { %v846_v9 = vadd.f32 1e-05, %v842_v8  ;;  %v1226_v10 = vpop.eup %1225 }
 0x264   : > { %v851_v11 = vmul.f32 %v1226_v10, %v823_v51 }
 0x265   : > { %1231 = vrsqrt.f32 %v846_v9 }
 0x266   : > { %v862_v15 = vmul.f32 %v1049_v12, %v851_v11 }
 0x267   : > { %v1228_v13 = vpop.eup %1227 }
 0x268   : > { %v852_v16 = vmul.f32 %v1228_v13, %v824_v58  ;;  %v873_v21 = vadd.f32 %v1050_v17, %v862_v15 }
 0x26a   : > { %v863_v19 = vmul.f32 %v1049_v12, %v852_v16 }
 0x26b   : > { %v1230_v14 = vpop.eup %1229 }
 0x26c   : > { %v853_v18 = vmul.f32 %v1230_v14, %v825_v54  ;;  %v874_v22 = vadd.f32 %v1050_v17, %v863_v19 }
 0x26e   : > { %v864_v23 = vmul.f32 %v1049_v12, %v853_v18  ;;  %v1075_v25 = vpack.c.bf16 %v874_v22, %v873_v21 }
 0x26f   : > { %v1232_v20 = vpop.eup %1231 }
 0x270   : > { %v854_v24 = vmul.f32 %v1232_v20, %v826_v60  ;;  %1076 = vst [vmem:[%s1451_s6] sm:$0xff] %v1075_v25   ;;  %v875_v27 = vadd.f32 %v1050_v17, %v864_v23 }
 0x272   : > { %v865_v26 = vmul.f32 %v1049_v12, %v854_v24 }
 0x274   : > { %v876_v28 = vadd.f32 %v1050_v17, %v865_v26 }
 0x276   : > { %v1080_v29 = vpack.c.bf16 %v876_v28, %v875_v27 }
 0x278   : > { %1083 = vst [vmem:[%s1451_s6 + $0x8] sm:$0xff] %v1080_v29  }
 0x279 PF: > { %s16_s25 = sadd.s32 1, %s1271_s25   ;;  %s1452_s21 = smov %s1259_s22 }
 0x27a   : > { %p13_p12 = scmp.ge.s32.totalorder %s16_s25, 6   ;;  %s1453_s22 = smov %s1344_s29 }
 0x27b   : > { %s1454_s23 = smov %s1267_s24  ;;  %s1455_s24 = smov %s1457_s26 }
 0x27c   :  { %15 = sbr.rel (!%p13_p12) target bundleno = 3 (0x3), region = 116 }

// kernel: seq_context.9
= control target key start
LH: loop header
LB: loop body
LE: loop exit
PB: predicated region body
PF: predicated region fallthrough
CT: control target
= control target key end

     0   :  { %s306_s1 = inlined_call_operand.vmem [shape: bf16[128,128], index: 1, kind: input, shape index: {}]   ;;  %s307_s0 = inlined_call_operand.vmem [shape: bf16[32,128], index: 0, kind: input, shape index: {}]   ;;  %s308_s2 = inlined_call_operand.vmem [shape: f32[1,128], index: 2, kind: input, shape index: {}]   ;;  %s309_s3 = inlined_call_operand.vmem [shape: f32[32,128], index: 3, kind: output, shape index: {}]  }
   0x1   :  { %v231_v0 = vld [vmem:[%s306_s1] sm:$0xff]   ;;  %v232_v1 = vld [vmem:[%s306_s1 + $0x8] sm:$0xff]   ;;  %v233_v2 = vld [vmem:[%s306_s1 + $0x10] sm:$0xff]  }
   0x2   :  { %211 = vmatprep.subr.bf16.mxu0 %v231_v0  ;;  %v234_v3 = vld [vmem:[%s306_s1 + $0x18] sm:$0xff]   ;;  %v239_v4 = vld [vmem:[%s307_s0] sm:$0xff]   ;;  %v236_v6 = vld [vmem:[%s306_s1 + $0x28] sm:$0xff]  }
   0x3   :  { %212 = vmatpush3.bf16.msra.mxu0 %v231_v0  ;;  %227 = vmatprep.mubr.bf16.mxu0 %v239_v4  ;;  %v235_v5 = vld [vmem:[%s306_s1 + $0x20] sm:$0xff]   ;;  %v237_v7 = vld [vmem:[%s306_s1 + $0x30] sm:$0xff]   ;;  %v238_v8 = vld [vmem:[%s306_s1 + $0x38] sm:$0xff]  }
   0x4   :  { %213 = vmatprep.subr.bf16.mxu0 %v232_v1  ;;  %v240_v9 = vld [vmem:[%s307_s0 + $0x8] sm:$0xff]   ;;  %v200_v10 = vld [vmem:[%s308_s2] ss:$0 sm:$0xff] }
   0x7   :  { %214 = vmatpush3.bf16.msra.mxu0 %v232_v1 }
   0x8   :  { %215 = vmatprep.subr.bf16.mxu0 %v233_v2 }
   0xb   :  { %216 = vmatpush3.bf16.msra.mxu0 %v233_v2 }
   0xc   :  { %217 = vmatprep.subr.bf16.mxu0 %v234_v3 }
   0xf   :  { %218 = vmatpush3.bf16.msra.mxu0 %v234_v3 }
  0x10   :  { %219 = vmatprep.subr.bf16.mxu0 %v235_v5 }
  0x13   :  { %220 = vmatpush3.bf16.msra.mxu0 %v235_v5 }
  0x14   :  { %221 = vmatprep.subr.bf16.mxu0 %v236_v6 }
  0x17   :  { %222 = vmatpush3.bf16.msra.mxu0 %v236_v6 }
  0x18   :  { %223 = vmatprep.subr.bf16.mxu0 %v237_v7 }
  0x1b   :  { %224 = vmatpush3.bf16.msra.mxu0 %v237_v7 }
  0x1c   :  { %225 = vmatprep.subr.bf16.mxu0 %v238_v8 }
  0x1f   :  { %226 = vmatpush3.bf16.msra.mxu0 %v238_v8 }
  0x22   :  { %228 = vmatmul.mubr.bf16.vlgmr.msra.gmra.mrb[0].mxu0 %v240_v9 }
  0xf5   :  { %v229_v11 = vpop.f32.mrb[0].mxu0 }
  0xf6   :  { %v180_v12 = vadd.f32 %v229_v11, %v200_v10  ;;  %v141_v13 = vpop.f32.mrb[1].mxu0 }
  0xf7   :  { %v178_v14 = vadd.f32 %v200_v10, %v141_v13  ;;  %v230_v15 = vpop.f32.mrb[2].mxu0 }
  0xf8   :  { %184 = vst [vmem:[%s309_s3 + $0x10] sm:$0xff] %v180_v12  ;;  %v181_v16 = vadd.f32 %v230_v15, %v200_v10  ;;  %v144_v17 = vpop.f32.mrb[3].mxu0 }
  0xf9   :  { %182 = vst [vmem:[%s309_s3] sm:$0xff] %v178_v14  ;;  %v179_v18 = vadd.f32 %v200_v10, %v144_v17 }
  0xfa   :  { %185 = vst [vmem:[%s309_s3 + $0x18] sm:$0xff] %v181_v16 }
  0xfb   :  { %183 = vst [vmem:[%s309_s3 + $0x8] sm:$0xff] %v179_v18 }

</bundles_post_ra>
